<compile_context>
chip_gen: v7x
topology: tpu7x:2x2x1
jax: 0.10.0
libtpu: 0.0.40
codegen_flags: <defaults>
</compile_context>

<pallas_src>
import jax
import jax.numpy as jnp
from jax import lax
from jax.experimental import pallas as pl
from jax.experimental.pallas import tpu as pltpu

HIDDEN_LAYER_COUNT = 9
HIDDEN_LAYER_SIZE = 20
IN_LAYER_SIZE = 3
OUT_LAYER_SIZE = 2

# Inner column chunk: 512 batch points on lanes -> h is (20, 512) f32
# = 3 sublane-tiles x 4 lane-tiles = 12 live vregs through the layer stack.
CHUNK = 512
# Max batch tile per grid step. VMEM for the lane-padded (TM,3)/(TM,2) blocks
# is ~8 MiB double-buffered at TM=4096 -> fits every generation's scoped VMEM.
TM_MAX = 4096
# Aim for at least this many grid steps so the "parallel" axis keeps both v7x
# TensorCores busy when N is large.
TARGET_TILES = 8

# Default MXU precision passes the forward check; set to
# jax.lax.Precision.HIGHEST if this forward feeds PINN autodiff/derivatives
# (cost is negligible at these (20,20)x(20,512) shapes).
DOT_PRECISION = None


def _pick_tm(n):
    """Trace-time batch-tile selection: a multiple of CHUNK, capped at TM_MAX,
    targeting >= TARGET_TILES grid steps for large n (v7x megacore)."""
    n_chunks = pl.cdiv(n, CHUNK)
    chunks_per_tile = max(1, min(TM_MAX // CHUNK, pl.cdiv(n_chunks, TARGET_TILES)))
    return chunks_per_tile * CHUNK


def mlp_kernel(x_ref, wi_ref, bi_ref, wh_ref, bh_ref, wo_ref, bo_ref, o_ref):
    # x_ref: (TM, 3) row-major batch tile;  o_ref: (TM, 2) row-major output.
    # Params (grid-invariant, VMEM-resident): wi (20,3), bi (20,1),
    # wh (9,20,20), bh (9,20,1), wo (2,20), bo (2,1).
    n_chunks = x_ref.shape[0] // CHUNK

    def chunk_body(c, carry):
        start = pl.multiple_of(c * CHUNK, CHUNK)
        x_chunk = x_ref[pl.ds(start, CHUNK), :]                    # (CHUNK, 3)

        # Input layer: contract the trailing dim of both operands so the MXU
        # takes the row-major x chunk as the transposed operand.  The result
        # is batch-on-lanes (20, CHUNK) and stays lane-dense for the stack.
        a0 = lax.dot_general(
            wi_ref[...], x_chunk,
            dimension_numbers=(((1,), (1,)), ((), ())),
            preferred_element_type=jnp.float32,
            precision=DOT_PRECISION)
        h = jnp.tanh(a0 + bi_ref[...])                             # (20, CHUNK)

        # 9 hidden layers; static unroll over resident (20,20) weights.
        for l in range(HIDDEN_LAYER_COUNT):
            h = jnp.tanh(
                jnp.dot(wh_ref[l], h,
                        preferred_element_type=jnp.float32,
                        precision=DOT_PRECISION)
                + bh_ref[l])

        # Output layer: compute and bias-add lane-dense (2, CHUNK), then
        # transpose in-register for the row-major (CHUNK, 2) store.
        out_cols = jnp.dot(wo_ref[...], h,
                           preferred_element_type=jnp.float32,
                           precision=DOT_PRECISION) + bo_ref[...]   # (2, CHUNK)
        o_ref[pl.ds(start, CHUNK), :] = out_cols.T                  # (CHUNK, 2)
        return carry

    # fori_loop (not a Python unroll) bounds each chunk's live ranges so
    # register pressure stays ~12-24 vregs regardless of TM.
    lax.fori_loop(0, n_chunks, chunk_body, 0)


def net_forward(x, params):
    """x: (N, 3) f32 -> (N, 2) f32.  Row-major in, row-major out (no wrapper
    transposes); ragged N handled by Pallas partial-block clipping (no pad)."""
    wi, bi, wh, bh, wo, bo = params
    N = x.shape[0]

    tm = _pick_tm(N)
    n_tiles = pl.cdiv(N, tm)

    # Tiny one-time parameter re-layouts (< 4 KB total): weights as (out, in),
    # biases as (out, 1) columns for lane-broadcast adds.
    wi_t = wi.T                                                   # (20, 3)
    wo_t = wo.T                                                   # (2, 20)
    wh_t = jnp.swapaxes(wh, 1, 2)                                 # (9, 20, 20)
    bi_c = bi.reshape(HIDDEN_LAYER_SIZE, 1)                       # (20, 1)
    bh_c = bh.reshape(HIDDEN_LAYER_COUNT, HIDDEN_LAYER_SIZE, 1)   # (9, 20, 1)
    bo_c = bo.reshape(OUT_LAYER_SIZE, 1)                          # (2, 1)

    param0_2d = lambda i: (0, 0)
    param0_3d = lambda i: (0, 0, 0)

    return pl.pallas_call(
        mlp_kernel,
        out_shape=jax.ShapeDtypeStruct((N, OUT_LAYER_SIZE), jnp.float32),
        grid_spec=pltpu.PrefetchScalarGridSpec(
            num_scalar_prefetch=0,
            grid=(n_tiles,),
            in_specs=[
                # row-major batch tiles straight from HBM (no wrapper x.T)
                pl.BlockSpec((tm, IN_LAYER_SIZE), lambda i: (i, 0)),
                # grid-invariant full-extent parameter blocks (fetched once)
                pl.BlockSpec((HIDDEN_LAYER_SIZE, IN_LAYER_SIZE), param0_2d),
                pl.BlockSpec((HIDDEN_LAYER_SIZE, 1), param0_2d),
                pl.BlockSpec(
                    (HIDDEN_LAYER_COUNT, HIDDEN_LAYER_SIZE, HIDDEN_LAYER_SIZE),
                    param0_3d),
                pl.BlockSpec((HIDDEN_LAYER_COUNT, HIDDEN_LAYER_SIZE, 1), param0_3d),
                pl.BlockSpec((OUT_LAYER_SIZE, HIDDEN_LAYER_SIZE), param0_2d),
                pl.BlockSpec((OUT_LAYER_SIZE, 1), param0_2d),
            ],
            # row-major output tiles; partial last block clipped by Pallas
            out_specs=pl.BlockSpec((tm, OUT_LAYER_SIZE), lambda i: (i, 0)),
        ),
        compiler_params=pltpu.CompilerParams(
            dimension_semantics=("parallel",)),
    )(x, wi_t, bi_c, wh_t, bh_c, wo_t, bo_c)


def init_params(key):
    """Deterministic init mimicking PyTorch Linear default (U[-1/sqrt(fan_in), +])."""
    def linear(key, fan_in, fan_out):
        kw, kb = jax.random.split(key)
        bound = 1.0 / jnp.sqrt(fan_in)
        w = jax.random.uniform(kw, (fan_in, fan_out), jnp.float32, -bound, bound)
        b = jax.random.uniform(kb, (1, fan_out), jnp.float32, -bound, bound)
        return w, b

    keys = jax.random.split(key, HIDDEN_LAYER_COUNT + 2)
    wi, bi = linear(keys[0], IN_LAYER_SIZE, HIDDEN_LAYER_SIZE)
    wh_list, bh_list = [], []
    for l in range(HIDDEN_LAYER_COUNT):
        w, b = linear(keys[1 + l], HIDDEN_LAYER_SIZE, HIDDEN_LAYER_SIZE)
        wh_list.append(w)
        bh_list.append(b)
    wh = jnp.stack(wh_list)                    # (9, 20, 20)  (in, out) per layer
    bh = jnp.stack(bh_list)                    # (9, 1, 20)
    wo, bo = linear(keys[-1], HIDDEN_LAYER_SIZE, OUT_LAYER_SIZE)
    return wi, bi, wh, bh, wo, bo


def reference_forward(x, params):
    """Pure-JAX reference (row-major, like PyTorch) for correctness checking."""
    wi, bi, wh, bh, wo, bo = params
    h = jnp.tanh(x @ wi + bi)
    for l in range(HIDDEN_LAYER_COUNT):
        h = jnp.tanh(h @ wh[l] + bh[l])
    return h @ wo + bo


if __name__ == "__main__":
    key = jax.random.PRNGKey(0)
    kparam, kx = jax.random.split(key)
    params = init_params(kparam)

    # N = 8192 -> TM = 1024, 8 parallel grid steps (keeps both v7x TCs busy).
    N = 8192
    x = jax.random.normal(kx, (N, IN_LAYER_SIZE), jnp.float32)
    out = jax.block_until_ready(net_forward(x, params))
    ref = reference_forward(x, params)
    assert out.shape == (N, OUT_LAYER_SIZE)
    assert jnp.allclose(out, ref, atol=3e-5, rtol=3e-5)

    # Ragged tail: N not a multiple of CHUNK/TM exercises partial-block clipping
    # (no jnp.pad copy anywhere).
    N2 = 1000
    x2 = jax.random.normal(jax.random.PRNGKey(1), (N2, IN_LAYER_SIZE), jnp.float32)
    out2 = jax.block_until_ready(net_forward(x2, params))
    ref2 = reference_forward(x2, params)
    assert out2.shape == (N2, OUT_LAYER_SIZE)
    assert jnp.allclose(out2, ref2, atol=3e-5, rtol=3e-5)

    print("KERNEL_OK")
</pallas_src>

<mosaic_0001>
module attributes {stable_mosaic.version = 11 : i64} {
  func.func @mlp_kernel(%arg0: i32, %arg1: memref<1024x3xf32, #tpu.memory_space<vmem>>, %arg2: memref<20x3xf32, #tpu.memory_space<vmem>>, %arg3: memref<20x1xf32, #tpu.memory_space<vmem>>, %arg4: memref<9x20x20xf32, #tpu.memory_space<vmem>>, %arg5: memref<9x20x1xf32, #tpu.memory_space<vmem>>, %arg6: memref<2x20xf32, #tpu.memory_space<vmem>>, %arg7: memref<2x1xf32, #tpu.memory_space<vmem>>, %arg8: memref<1024x2xf32, #tpu.memory_space<vmem>>) attributes {dimension_semantics = [#tpu.dimension_semantics<parallel>], iteration_bounds = array<i64: 8>, scalar_prefetch = 0 : i64, scratch_operands = 0 : i64, tpu.core_type = #tpu.core_type<tc>, window_params = [{transform_indices = @transform_0, window_bounds = array<i64: 1024, 3>}, {pipeline_mode = #tpu.pipeline_mode<synchronous>, transform_indices = @transform_1, window_bounds = array<i64: 20, 3>}, {pipeline_mode = #tpu.pipeline_mode<synchronous>, transform_indices = @transform_2, window_bounds = array<i64: 20, 1>}, {pipeline_mode = #tpu.pipeline_mode<synchronous>, transform_indices = @transform_3, window_bounds = array<i64: 9, 20, 20>}, {pipeline_mode = #tpu.pipeline_mode<synchronous>, transform_indices = @transform_4, window_bounds = array<i64: 9, 20, 1>}, {pipeline_mode = #tpu.pipeline_mode<synchronous>, transform_indices = @transform_5, window_bounds = array<i64: 2, 20>}, {pipeline_mode = #tpu.pipeline_mode<synchronous>, transform_indices = @transform_6, window_bounds = array<i64: 2, 1>}, {transform_indices = @transform_7, window_bounds = array<i64: 1024, 2>}]} {
    %c0_i32 = arith.constant 0 : i32
    %c2_i32 = arith.constant 2 : i32
    %0 = arith.addi %c0_i32, %c2_i32 : i32
    %c1_i32 = arith.constant 1 : i32
    scf.for %arg9 = %c0_i32 to %0 step %c1_i32  : i32 {
      %c512_i32 = arith.constant 512 : i32
      %1 = arith.muli %arg9, %c512_i32 : i32
      %2 = tpu.assume_multiple %1, 512 : i32
      %3 = arith.index_cast %2 : i32 to index
      %c0 = arith.constant 0 : index
      %4 = vector.load %arg1[%3, %c0] : memref<1024x3xf32, #tpu.memory_space<vmem>>, vector<512x3xf32>
      %c0_1 = arith.constant 0 : index
      %c0_2 = arith.constant 0 : index
      %5 = vector.load %arg2[%c0_1, %c0_2] : memref<20x3xf32, #tpu.memory_space<vmem>>, vector<20x3xf32>
      %cst = arith.constant dense<0.000000e+00> : vector<20x512xf32>
      %6 = tpu.matmul %5, %4, %cst {dimension_numbers = #tpu.dot_dimension_numbers<[1], [1], [0], [0], [0, 0, 1, 0], [], []>} : vector<20x3xf32>, vector<512x3xf32>, vector<20x512xf32> -> vector<20x512xf32>
      %c0_3 = arith.constant 0 : index
      %c0_4 = arith.constant 0 : index
      %7 = vector.load %arg3[%c0_3, %c0_4] : memref<20x1xf32, #tpu.memory_space<vmem>>, vector<20x1xf32>
      %8 = vector.broadcast %7 : vector<20x1xf32> to vector<20x512xf32>
      %9 = arith.addf %6, %8 : vector<20x512xf32>
      %10 = math.tanh %9 : vector<20x512xf32>
      %c0_5 = arith.constant 0 : index
      %c0_6 = arith.constant 0 : index
      %c0_7 = arith.constant 0 : index
      %11 = vector.load %arg4[%c0_5, %c0_6, %c0_7] : memref<9x20x20xf32, #tpu.memory_space<vmem>>, vector<1x20x20xf32>
      %12 = vector.shape_cast %11 : vector<1x20x20xf32> to vector<20x20xf32>
      %cst_8 = arith.constant dense<0.000000e+00> : vector<20x512xf32>
      %13 = tpu.matmul %12, %10, %cst_8 {dimension_numbers = #tpu.dot_dimension_numbers<[1], [0], [0], [1], [0, 0, 1, 1], [], []>} : vector<20x20xf32>, vector<20x512xf32>, vector<20x512xf32> -> vector<20x512xf32>
      %c0_9 = arith.constant 0 : index
      %c0_10 = arith.constant 0 : index
      %c0_11 = arith.constant 0 : index
      %14 = vector.load %arg5[%c0_9, %c0_10, %c0_11] : memref<9x20x1xf32, #tpu.memory_space<vmem>>, vector<1x20x1xf32>
      %15 = vector.shape_cast %14 : vector<1x20x1xf32> to vector<20x1xf32>
      %16 = vector.broadcast %15 : vector<20x1xf32> to vector<20x512xf32>
      %17 = arith.addf %13, %16 : vector<20x512xf32>
      %18 = math.tanh %17 : vector<20x512xf32>
      %c1 = arith.constant 1 : index
      %c0_12 = arith.constant 0 : index
      %c0_13 = arith.constant 0 : index
      %19 = vector.load %arg4[%c1, %c0_12, %c0_13] : memref<9x20x20xf32, #tpu.memory_space<vmem>>, vector<1x20x20xf32>
      %20 = vector.shape_cast %19 : vector<1x20x20xf32> to vector<20x20xf32>
      %cst_14 = arith.constant dense<0.000000e+00> : vector<20x512xf32>
      %21 = tpu.matmul %20, %18, %cst_14 {dimension_numbers = #tpu.dot_dimension_numbers<[1], [0], [0], [1], [0, 0, 1, 1], [], []>} : vector<20x20xf32>, vector<20x512xf32>, vector<20x512xf32> -> vector<20x512xf32>
      %c1_15 = arith.constant 1 : index
      %c0_16 = arith.constant 0 : index
      %c0_17 = arith.constant 0 : index
      %22 = vector.load %arg5[%c1_15, %c0_16, %c0_17] : memref<9x20x1xf32, #tpu.memory_space<vmem>>, vector<1x20x1xf32>
      %23 = vector.shape_cast %22 : vector<1x20x1xf32> to vector<20x1xf32>
      %24 = vector.broadcast %23 : vector<20x1xf32> to vector<20x512xf32>
      %25 = arith.addf %21, %24 : vector<20x512xf32>
      %26 = math.tanh %25 : vector<20x512xf32>
      %c2 = arith.constant 2 : index
      %c0_18 = arith.constant 0 : index
      %c0_19 = arith.constant 0 : index
      %27 = vector.load %arg4[%c2, %c0_18, %c0_19] : memref<9x20x20xf32, #tpu.memory_space<vmem>>, vector<1x20x20xf32>
      %28 = vector.shape_cast %27 : vector<1x20x20xf32> to vector<20x20xf32>
      %cst_20 = arith.constant dense<0.000000e+00> : vector<20x512xf32>
      %29 = tpu.matmul %28, %26, %cst_20 {dimension_numbers = #tpu.dot_dimension_numbers<[1], [0], [0], [1], [0, 0, 1, 1], [], []>} : vector<20x20xf32>, vector<20x512xf32>, vector<20x512xf32> -> vector<20x512xf32>
      %c2_21 = arith.constant 2 : index
      %c0_22 = arith.constant 0 : index
      %c0_23 = arith.constant 0 : index
      %30 = vector.load %arg5[%c2_21, %c0_22, %c0_23] : memref<9x20x1xf32, #tpu.memory_space<vmem>>, vector<1x20x1xf32>
      %31 = vector.shape_cast %30 : vector<1x20x1xf32> to vector<20x1xf32>
      %32 = vector.broadcast %31 : vector<20x1xf32> to vector<20x512xf32>
      %33 = arith.addf %29, %32 : vector<20x512xf32>
      %34 = math.tanh %33 : vector<20x512xf32>
      %c3 = arith.constant 3 : index
      %c0_24 = arith.constant 0 : index
      %c0_25 = arith.constant 0 : index
      %35 = vector.load %arg4[%c3, %c0_24, %c0_25] : memref<9x20x20xf32, #tpu.memory_space<vmem>>, vector<1x20x20xf32>
      %36 = vector.shape_cast %35 : vector<1x20x20xf32> to vector<20x20xf32>
      %cst_26 = arith.constant dense<0.000000e+00> : vector<20x512xf32>
      %37 = tpu.matmul %36, %34, %cst_26 {dimension_numbers = #tpu.dot_dimension_numbers<[1], [0], [0], [1], [0, 0, 1, 1], [], []>} : vector<20x20xf32>, vector<20x512xf32>, vector<20x512xf32> -> vector<20x512xf32>
      %c3_27 = arith.constant 3 : index
      %c0_28 = arith.constant 0 : index
      %c0_29 = arith.constant 0 : index
      %38 = vector.load %arg5[%c3_27, %c0_28, %c0_29] : memref<9x20x1xf32, #tpu.memory_space<vmem>>, vector<1x20x1xf32>
      %39 = vector.shape_cast %38 : vector<1x20x1xf32> to vector<20x1xf32>
      %40 = vector.broadcast %39 : vector<20x1xf32> to vector<20x512xf32>
      %41 = arith.addf %37, %40 : vector<20x512xf32>
      %42 = math.tanh %41 : vector<20x512xf32>
      %c4 = arith.constant 4 : index
      %c0_30 = arith.constant 0 : index
      %c0_31 = arith.constant 0 : index
      %43 = vector.load %arg4[%c4, %c0_30, %c0_31] : memref<9x20x20xf32, #tpu.memory_space<vmem>>, vector<1x20x20xf32>
      %44 = vector.shape_cast %43 : vector<1x20x20xf32> to vector<20x20xf32>
      %cst_32 = arith.constant dense<0.000000e+00> : vector<20x512xf32>
      %45 = tpu.matmul %44, %42, %cst_32 {dimension_numbers = #tpu.dot_dimension_numbers<[1], [0], [0], [1], [0, 0, 1, 1], [], []>} : vector<20x20xf32>, vector<20x512xf32>, vector<20x512xf32> -> vector<20x512xf32>
      %c4_33 = arith.constant 4 : index
      %c0_34 = arith.constant 0 : index
      %c0_35 = arith.constant 0 : index
      %46 = vector.load %arg5[%c4_33, %c0_34, %c0_35] : memref<9x20x1xf32, #tpu.memory_space<vmem>>, vector<1x20x1xf32>
      %47 = vector.shape_cast %46 : vector<1x20x1xf32> to vector<20x1xf32>
      %48 = vector.broadcast %47 : vector<20x1xf32> to vector<20x512xf32>
      %49 = arith.addf %45, %48 : vector<20x512xf32>
      %50 = math.tanh %49 : vector<20x512xf32>
      %c5 = arith.constant 5 : index
      %c0_36 = arith.constant 0 : index
      %c0_37 = arith.constant 0 : index
      %51 = vector.load %arg4[%c5, %c0_36, %c0_37] : memref<9x20x20xf32, #tpu.memory_space<vmem>>, vector<1x20x20xf32>
      %52 = vector.shape_cast %51 : vector<1x20x20xf32> to vector<20x20xf32>
      %cst_38 = arith.constant dense<0.000000e+00> : vector<20x512xf32>
      %53 = tpu.matmul %52, %50, %cst_38 {dimension_numbers = #tpu.dot_dimension_numbers<[1], [0], [0], [1], [0, 0, 1, 1], [], []>} : vector<20x20xf32>, vector<20x512xf32>, vector<20x512xf32> -> vector<20x512xf32>
      %c5_39 = arith.constant 5 : index
      %c0_40 = arith.constant 0 : index
      %c0_41 = arith.constant 0 : index
      %54 = vector.load %arg5[%c5_39, %c0_40, %c0_41] : memref<9x20x1xf32, #tpu.memory_space<vmem>>, vector<1x20x1xf32>
      %55 = vector.shape_cast %54 : vector<1x20x1xf32> to vector<20x1xf32>
      %56 = vector.broadcast %55 : vector<20x1xf32> to vector<20x512xf32>
      %57 = arith.addf %53, %56 : vector<20x512xf32>
      %58 = math.tanh %57 : vector<20x512xf32>
      %c6 = arith.constant 6 : index
      %c0_42 = arith.constant 0 : index
      %c0_43 = arith.constant 0 : index
      %59 = vector.load %arg4[%c6, %c0_42, %c0_43] : memref<9x20x20xf32, #tpu.memory_space<vmem>>, vector<1x20x20xf32>
      %60 = vector.shape_cast %59 : vector<1x20x20xf32> to vector<20x20xf32>
      %cst_44 = arith.constant dense<0.000000e+00> : vector<20x512xf32>
      %61 = tpu.matmul %60, %58, %cst_44 {dimension_numbers = #tpu.dot_dimension_numbers<[1], [0], [0], [1], [0, 0, 1, 1], [], []>} : vector<20x20xf32>, vector<20x512xf32>, vector<20x512xf32> -> vector<20x512xf32>
      %c6_45 = arith.constant 6 : index
      %c0_46 = arith.constant 0 : index
      %c0_47 = arith.constant 0 : index
      %62 = vector.load %arg5[%c6_45, %c0_46, %c0_47] : memref<9x20x1xf32, #tpu.memory_space<vmem>>, vector<1x20x1xf32>
      %63 = vector.shape_cast %62 : vector<1x20x1xf32> to vector<20x1xf32>
      %64 = vector.broadcast %63 : vector<20x1xf32> to vector<20x512xf32>
      %65 = arith.addf %61, %64 : vector<20x512xf32>
      %66 = math.tanh %65 : vector<20x512xf32>
      %c7 = arith.constant 7 : index
      %c0_48 = arith.constant 0 : index
      %c0_49 = arith.constant 0 : index
      %67 = vector.load %arg4[%c7, %c0_48, %c0_49] : memref<9x20x20xf32, #tpu.memory_space<vmem>>, vector<1x20x20xf32>
      %68 = vector.shape_cast %67 : vector<1x20x20xf32> to vector<20x20xf32>
      %cst_50 = arith.constant dense<0.000000e+00> : vector<20x512xf32>
      %69 = tpu.matmul %68, %66, %cst_50 {dimension_numbers = #tpu.dot_dimension_numbers<[1], [0], [0], [1], [0, 0, 1, 1], [], []>} : vector<20x20xf32>, vector<20x512xf32>, vector<20x512xf32> -> vector<20x512xf32>
      %c7_51 = arith.constant 7 : index
      %c0_52 = arith.constant 0 : index
      %c0_53 = arith.constant 0 : index
      %70 = vector.load %arg5[%c7_51, %c0_52, %c0_53] : memref<9x20x1xf32, #tpu.memory_space<vmem>>, vector<1x20x1xf32>
      %71 = vector.shape_cast %70 : vector<1x20x1xf32> to vector<20x1xf32>
      %72 = vector.broadcast %71 : vector<20x1xf32> to vector<20x512xf32>
      %73 = arith.addf %69, %72 : vector<20x512xf32>
      %74 = math.tanh %73 : vector<20x512xf32>
      %c8 = arith.constant 8 : index
      %c0_54 = arith.constant 0 : index
      %c0_55 = arith.constant 0 : index
      %75 = vector.load %arg4[%c8, %c0_54, %c0_55] : memref<9x20x20xf32, #tpu.memory_space<vmem>>, vector<1x20x20xf32>
      %76 = vector.shape_cast %75 : vector<1x20x20xf32> to vector<20x20xf32>
      %cst_56 = arith.constant dense<0.000000e+00> : vector<20x512xf32>
      %77 = tpu.matmul %76, %74, %cst_56 {dimension_numbers = #tpu.dot_dimension_numbers<[1], [0], [0], [1], [0, 0, 1, 1], [], []>} : vector<20x20xf32>, vector<20x512xf32>, vector<20x512xf32> -> vector<20x512xf32>
      %c8_57 = arith.constant 8 : index
      %c0_58 = arith.constant 0 : index
      %c0_59 = arith.constant 0 : index
      %78 = vector.load %arg5[%c8_57, %c0_58, %c0_59] : memref<9x20x1xf32, #tpu.memory_space<vmem>>, vector<1x20x1xf32>
      %79 = vector.shape_cast %78 : vector<1x20x1xf32> to vector<20x1xf32>
      %80 = vector.broadcast %79 : vector<20x1xf32> to vector<20x512xf32>
      %81 = arith.addf %77, %80 : vector<20x512xf32>
      %82 = math.tanh %81 : vector<20x512xf32>
      %c0_60 = arith.constant 0 : index
      %c0_61 = arith.constant 0 : index
      %83 = vector.load %arg6[%c0_60, %c0_61] : memref<2x20xf32, #tpu.memory_space<vmem>>, vector<2x20xf32>
      %cst_62 = arith.constant dense<0.000000e+00> : vector<2x512xf32>
      %84 = tpu.matmul %83, %82, %cst_62 {dimension_numbers = #tpu.dot_dimension_numbers<[1], [0], [0], [1], [0, 0, 1, 1], [], []>} : vector<2x20xf32>, vector<20x512xf32>, vector<2x512xf32> -> vector<2x512xf32>
      %c0_63 = arith.constant 0 : index
      %c0_64 = arith.constant 0 : index
      %85 = vector.load %arg7[%c0_63, %c0_64] : memref<2x1xf32, #tpu.memory_space<vmem>>, vector<2x1xf32>
      %86 = vector.broadcast %85 : vector<2x1xf32> to vector<2x512xf32>
      %87 = arith.addf %84, %86 : vector<2x512xf32>
      %88 = tpu.transpose %87, [1, 0] : vector<2x512xf32> -> vector<512x2xf32>
      %89 = arith.index_cast %2 : i32 to index
      %c0_65 = arith.constant 0 : index
      %90 = vector.load %arg8[%89, %c0_65] : memref<1024x2xf32, #tpu.memory_space<vmem>>, vector<512x2xf32>
      tpu.vector_store %arg8[%89, %c0_65], %88 {strides = array<i32>} : memref<1024x2xf32, #tpu.memory_space<vmem>>, vector<512x2xf32>,
    }
    %c2_i32_0 = arith.constant 2 : i32
    return
  }
  func.func @transform_0(%arg0: i32) -> (i32, i32) {
    %c0_i32 = arith.constant 0 : i32
    %c0_i32_0 = arith.constant 0 : i32
    return %arg0, %c0_i32 : i32, i32
  }
  func.func @transform_1(%arg0: i32) -> (i32, i32) {
    %c0_i32 = arith.constant 0 : i32
    %c0_i32_0 = arith.constant 0 : i32
    %c0_i32_1 = arith.constant 0 : i32
    return %c0_i32, %c0_i32_0 : i32, i32
  }
  func.func @transform_2(%arg0: i32) -> (i32, i32) {
    %c0_i32 = arith.constant 0 : i32
    %c0_i32_0 = arith.constant 0 : i32
    %c0_i32_1 = arith.constant 0 : i32
    return %c0_i32, %c0_i32_0 : i32, i32
  }
  func.func @transform_3(%arg0: i32) -> (i32, i32, i32) {
    %c0_i32 = arith.constant 0 : i32
    %c0_i32_0 = arith.constant 0 : i32
    %c0_i32_1 = arith.constant 0 : i32
    %c0_i32_2 = arith.constant 0 : i32
    return %c0_i32, %c0_i32_0, %c0_i32_1 : i32, i32, i32
  }
  func.func @transform_4(%arg0: i32) -> (i32, i32, i32) {
    %c0_i32 = arith.constant 0 : i32
    %c0_i32_0 = arith.constant 0 : i32
    %c0_i32_1 = arith.constant 0 : i32
    %c0_i32_2 = arith.constant 0 : i32
    return %c0_i32, %c0_i32_0, %c0_i32_1 : i32, i32, i32
  }
  func.func @transform_5(%arg0: i32) -> (i32, i32) {
    %c0_i32 = arith.constant 0 : i32
    %c0_i32_0 = arith.constant 0 : i32
    %c0_i32_1 = arith.constant 0 : i32
    return %c0_i32, %c0_i32_0 : i32, i32
  }
  func.func @transform_6(%arg0: i32) -> (i32, i32) {
    %c0_i32 = arith.constant 0 : i32
    %c0_i32_0 = arith.constant 0 : i32
    %c0_i32_1 = arith.constant 0 : i32
    return %c0_i32, %c0_i32_0 : i32, i32
  }
  func.func @transform_7(%arg0: i32) -> (i32, i32) {
    %c0_i32 = arith.constant 0 : i32
    %c0_i32_0 = arith.constant 0 : i32
    return %arg0, %c0_i32 : i32, i32
  }
}

</mosaic_0001>

<bundles_post_ra>
// kernel: tpu_custom_call.1
= control target key start
LH: loop header
LB: loop body
LE: loop exit
PB: predicated region body
PF: predicated region fallthrough
CT: control target
= control target key end

     0   :  { %s3972_s24 = smov 0   ;;  %s4630_s0 = inlined_call_operand.vmem [shape: f32[8192,3], index: 0, kind: input, shape index: {}]   ;;  %s4631_s1 = inlined_call_operand.vmem [shape: f32[20,3], index: 1, kind: input, shape index: {}]   ;;  %s4632_s2 = inlined_call_operand.vmem [shape: f32[20,1], index: 2, kind: input, shape index: {}]   ;;  %s4633_s3 = inlined_call_operand.vmem [shape: f32[9,20,20], index: 3, kind: input, shape index: {}]   ;;  %s4634_s4 = inlined_call_operand.vmem [shape: f32[9,20,1], index: 4, kind: input, shape index: {}]   ;;  %s4635_s5 = inlined_call_operand.vmem [shape: f32[2,20], index: 5, kind: input, shape index: {}]   ;;  %s4636_s6 = inlined_call_operand.vmem [shape: f32[2,1], index: 6, kind: input, shape index: {}]   ;;  %s4637_s7 = inlined_call_operand.vmem [shape: f32[8192,2], index: 7, kind: output, shape index: {}]  }
   0x1 LB: > { %s3176_s25 = sadd.s32 4294967295, %s3924_s24   ;;  %p3180_p0 = scmp.ge.s32.totalorder %s3924_s24, 1  ;;  %s3924_s24 = sphi %s3972_s24, %s17_s24  }
   0x2   : > { %p238_p1 = scmp.lt.s32.totalorder %s3924_s24, 9 }
   0x4   : > { %p239_p2 = pnand %p3180_p0, %p238_p1 }
   0x5   : > { %s3181_s26 = sshll.u32 (!%p239_p2), %s3176_s25, 7  ;;  %s3990_s11 = smov (!%p239_p2), 0  }
   0x6   : > { %242 = sbr.rel (%p239_p2) target bundleno = 2946 (0xb82), region = 48  ;;  %p271_p3 = scmp.lt.s32.totalorder (!%p239_p2), %s3181_s26, 1023 }
   0xd   : > { %s4641_s26 = smov (!%p271_p3, %s3181_s26), 1023 }
   0xe   : > { %s3182_s27 = sshll.u32 %s4641_s26, 3 }
   0xf   : > { %s3983_s30 = scalar_lea.vmem %s4630_s0, %s3182_s27  ;;  %s3988_s10 = scalar_lea.vmem %s4637_s7, %s3182_s27 }
  0x10 LB: >> { %vm375_vm0 = vcmask 23552   ;;  %v3998_v0 = vld [vmem:[%s4631_s1] sm:$0xff]  ;;  %s3185_s16 = sshll.u32 %s3928_s11, 9  ;;  %v3930_v2 = vmov 0   ;;  %v359_v3 = vld [vmem:[%s4632_s2 + $0x10] sm:$0xf]  ;;  %s3928_s11 = sphi %s3990_s11, %s287_s11  }
  0x11   : >> { %3434 = vmatprep.mubr.msk.f32.mxu0 %vm375_vm0, %v3998_v0  ;;  %3472 = vmatprep.mubr.msk.f32.mxu1 %vm375_vm0, %v3998_v0  ;;  %v357_v1 = vld [vmem:[%s4632_s2] sm:$0xff]  ;;  %s4014_s19 = scalar_lea.vmem %s3983_s30, %s3185_s16  ;;  %vm4018_vm1 = vmpackc.low %vm375_vm0, %vm375_vm0  ;;  %v358_v5 = vld [vmem:[%s4632_s2 + $0x8] sm:$0xff]  ;;  %vm786_vm2 = vcmask 1043456   ;;  %vm776_vm3 = vcmask 162816   ;;  %s4494_s13 = scalar_lea.vmem %s3988_s10, %s3185_s16  ;;  %vm3046_vm4 = vcmask 15360  }
  0x12   : >> { %3672 = vset.pattern.permute.xlu0 %v3930_v2  ;;  %3673 = vset.pattern.permute.xlu1 %v3930_v2  ;;  %v306_v6 = vld [vmem:[%s4014_s19 + $0x80] sm:$0xff]  ;;  %v307_v7 = vld [vmem:[%s4014_s19 + $0x88] sm:$0xff]  ;;  %v308_v18 = vld [vmem:[%s4014_s19 + $0x90] sm:$0xff]  ;;  %s287_s11 = sadd.s32 1, %s3928_s11  }
  0x13   : >> { %362 = vperm.xlu0 %3672, %v357_v1   ;;  %372 = vperm.xlu1 %3673, %v359_v3   ;;  %v338_v8 = vld [vmem:[%s4014_s19 + $0x180] sm:$0xff]  ;;  %v3478_v10 = vpack.c.bf16 %v307_v7, %v306_v6  ;;  %v339_v11 = vld [vmem:[%s4014_s19 + $0x188] sm:$0xff]  ;;  %v309_v20 = vld [vmem:[%s4014_s19 + $0x98] sm:$0xff]  ;;  %p284_p4 = scmp.ge.s32.totalorder %s287_s11, 2  }
  0x14   : >> { %v758_v9 = vld [vmem:[%s4634_s4] sm:$0xff]  ;;  %v291_v13 = vld [vmem:[%s4014_s19 + $0x8] sm:$0xff]  ;;  %v3526_v14 = vpack.c.bf16 %v339_v11, %v338_v8  ;;  %v340_v21 = vld [vmem:[%s4014_s19 + $0x190] sm:$0xff]  ;;  %v3484_v23 = vpack.c.bf16 %v309_v20, %v308_v18 }
  0x15   : >> { %v290_v12 = vld [vmem:[%s4014_s19] sm:$0xff]  ;;  %v323_v17 = vld [vmem:[%s4014_s19 + $0x108] sm:$0xff]  ;;  %3480 = vmatprep.subr.msk.bf16.mxu0 %vm4018_vm1, %v3478_v10  ;;  %v341_v22 = vld [vmem:[%s4014_s19 + $0x198] sm:$0xff] }
  0x16   : >> { %v3481_v15 = vpack.c.bf16 %v291_v13, %v290_v12  ;;  %v322_v16 = vld [vmem:[%s4014_s19 + $0x100] sm:$0xff]  ;;  %3528 = vmatprep.subr.msk.bf16.mxu1 %vm4018_vm1, %v3526_v14  ;;  %v3532_v24 = vpack.c.bf16 %v341_v22, %v340_v21  ;;  %v759_v25 = vld [vmem:[%s4634_s4 + $0x8] sm:$0xff]  ;;  %v292_v26 = vld [vmem:[%s4014_s19 + $0x10] sm:$0xff] }
  0x17   : >> { %v3529_v19 = vpack.c.bf16 %v323_v17, %v322_v16  ;;  %367 = vperm.xlu0 %3672, %v358_v5   ;;  %v293_v27 = vld [vmem:[%s4014_s19 + $0x18] sm:$0xff]  ;;  %v324_v28 = vld [vmem:[%s4014_s19 + $0x110] sm:$0xff]  ;;  %763 = vperm.xlu1 %3673, %v758_v9   ;;  %v310_v30 = vld [vmem:[%s4014_s19 + $0xa0] sm:$0xff] }
  0x18   : >> { %3483 = vmatpush3.bf16.xpose.msk.msra.mxu0 %vm4018_vm1, %v3481_v15  ;;  %v325_v29 = vld [vmem:[%s4014_s19 + $0x118] sm:$0xff]  ;;  %v311_v31 = vld [vmem:[%s4014_s19 + $0xa8] sm:$0xff]  ;;  %v342_v32 = vld [vmem:[%s4014_s19 + $0x1a0] sm:$0xff]  ;;  %v3487_v34 = vpack.c.bf16 %v293_v27, %v292_v26 }
  0x19   : >> { %3531 = vmatpush3.bf16.xpose.msk.msra.mxu1 %vm4018_vm1, %v3529_v19  ;;  %3486 = vmatprep.subr.msk.bf16.mxu0 %vm4018_vm1, %v3484_v23  ;;  %v343_v33 = vld [vmem:[%s4014_s19 + $0x1a8] sm:$0xff]  ;;  %v3269_v35 = vld [vmem:[%s4634_s4 + $0x18] sm:$0xff]  ;;  %v3535_v36 = vpack.c.bf16 %v325_v29, %v324_v28  ;;  %v3490_v37 = vpack.c.bf16 %v311_v31, %v310_v30  ;;  %v294_v40 = vld [vmem:[%s4014_s19 + $0x20] sm:$0xff] }
  0x1a   : >> { %3534 = vmatprep.subr.msk.bf16.mxu1 %vm4018_vm1, %v3532_v24  ;;  %v3538_v38 = vpack.c.bf16 %v343_v33, %v342_v32  ;;  %v3271_v39 = vld [vmem:[%s4634_s4 + $0x28] sm:$0xf]  ;;  %v326_v42 = vld [vmem:[%s4014_s19 + $0x120] sm:$0xff]  ;;  %v312_v44 = vld [vmem:[%s4014_s19 + $0xb0] sm:$0xff] }
  0x1b   : >> { %768 = vperm.xlu0 %3672, %v759_v25   ;;  %v295_v41 = vld [vmem:[%s4014_s19 + $0x28] sm:$0xff]  ;;  %v313_v45 = vld [vmem:[%s4014_s19 + $0xb8] sm:$0xff]  ;;  %v344_v46 = vld [vmem:[%s4014_s19 + $0x1b0] sm:$0xff] }
  0x1c   : >> { %v327_v43 = vld [vmem:[%s4014_s19 + $0x128] sm:$0xff]  ;;  %v345_v47 = vld [vmem:[%s4014_s19 + $0x1b8] sm:$0xff]  ;;  %v3493_v48 = vpack.c.bf16 %v295_v41, %v294_v40  ;;  %v3496_v51 = vpack.c.bf16 %v313_v45, %v312_v44  ;;  %v296_v53 = vld [vmem:[%s4014_s19 + $0x30] sm:$0xff] }
  0x1d   : >> { %v3286_v49 = vld [vmem:[%s4634_s4 + $0x38] sm:$0xff]  ;;  %v3541_v50 = vpack.c.bf16 %v327_v43, %v326_v42  ;;  %v3544_v52 = vpack.c.bf16 %v345_v47, %v344_v46  ;;  %v328_v55 = vld [vmem:[%s4014_s19 + $0x130] sm:$0xff]  ;;  %v3301_v57 = vld [vmem:[%s4634_s4 + $0x48] sm:$0xff] }
  0x1e   : >> { %v297_v54 = vld [vmem:[%s4014_s19 + $0x38] sm:$0xff]  ;;  %v760_v56 = vld [vmem:[%s4634_s4 + $0x10] sm:$0xf]  ;;  %v314_v59 = vld [vmem:[%s4014_s19 + $0xc0] sm:$0xff] }
  0x1f   : >> { %987 = vperm.xlu0 %3672, %v3269_v35   ;;  %v329_v58 = vld [vmem:[%s4014_s19 + $0x138] sm:$0xff]  ;;  %v315_v60 = vld [vmem:[%s4014_s19 + $0xc8] sm:$0xff]  ;;  %773 = vperm.xlu1 %3673, %v760_v56   ;;  %v346_v61 = vld [vmem:[%s4014_s19 + $0x1c0] sm:$0xff]  ;;  %v3499_v1 = vpack.c.bf16 %v297_v54, %v296_v53 }
  0x20   : >> { %3489 = vmatpush3.bf16.xpose.msk.msra.mxu0 %vm4018_vm1, %v3487_v34  ;;  %v347_v62 = vld [vmem:[%s4014_s19 + $0x1c8] sm:$0xff]  ;;  %v3270_v63 = vld [vmem:[%s4634_s4 + $0x20] sm:$0xff]  ;;  %v3303_v2 = vld [vmem:[%s4634_s4 + $0x58] sm:$0xf]  ;;  %v3547_v3 = vpack.c.bf16 %v329_v58, %v328_v55  ;;  %v3502_v5 = vpack.c.bf16 %v315_v60, %v314_v59 }
  0x21   : >> { %3537 = vmatpush3.bf16.xpose.msk.msra.mxu1 %vm4018_vm1, %v3535_v36  ;;  %3492 = vmatprep.subr.msk.bf16.mxu0 %vm4018_vm1, %v3490_v37  ;;  %v3550_v6 = vpack.c.bf16 %v347_v62, %v346_v61  ;;  %v3285_v7 = vld [vmem:[%s4634_s4 + $0x30] sm:$0xff]  ;;  %v3318_v8 = vld [vmem:[%s4634_s4 + $0x68] sm:$0xff]  ;;  %v298_v9 = vld [vmem:[%s4014_s19 + $0x40] sm:$0xff] }
  0x22   : >> { %3540 = vmatprep.subr.msk.bf16.mxu1 %vm4018_vm1, %v3538_v38  ;;  %v299_v10 = vld [vmem:[%s4014_s19 + $0x48] sm:$0xff]  ;;  %v330_v11 = vld [vmem:[%s4014_s19 + $0x140] sm:$0xff]  ;;  %v316_v13 = vld [vmem:[%s4014_s19 + $0xd0] sm:$0xff] }
  0x23   : >> { %997 = vperm.xlu0 %3672, %v3271_v39   ;;  %992 = vperm.xlu1 %3673, %v3270_v63   ;;  %v331_v12 = vld [vmem:[%s4014_s19 + $0x148] sm:$0xff]  ;;  %v317_v14 = vld [vmem:[%s4014_s19 + $0xd8] sm:$0xff]  ;;  %v348_v15 = vld [vmem:[%s4014_s19 + $0x1d0] sm:$0xff]  ;;  %v3505_v18 = vpack.c.bf16 %v299_v10, %v298_v9 }
  0x24   : >> { %v349_v16 = vld [vmem:[%s4014_s19 + $0x1d8] sm:$0xff]  ;;  %v3287_v17 = vld [vmem:[%s4634_s4 + $0x40] sm:$0xf]  ;;  %v3553_v20 = vpack.c.bf16 %v331_v12, %v330_v11  ;;  %v3508_v21 = vpack.c.bf16 %v317_v14, %v316_v13  ;;  %v3302_v23 = vld [vmem:[%s4634_s4 + $0x50] sm:$0xff] }
  0x25   : >> { %v3333_v19 = vld [vmem:[%s4634_s4 + $0x78] sm:$0xff]  ;;  %v3556_v22 = vpack.c.bf16 %v349_v16, %v348_v15  ;;  %v3335_v24 = vld [vmem:[%s4634_s4 + $0x88] sm:$0xf]  ;;  %v300_v25 = vld [vmem:[%s4014_s19 + $0x50] sm:$0xff] }
  0x26   : >> { %v301_v26 = vld [vmem:[%s4014_s19 + $0x58] sm:$0xff]  ;;  %v332_v27 = vld [vmem:[%s4014_s19 + $0x150] sm:$0xff]  ;;  %v318_v29 = vld [vmem:[%s4014_s19 + $0xe0] sm:$0xff] }
  0x27   : >> { %1214 = vperm.xlu0 %3672, %v3286_v49   ;;  %1209 = vperm.xlu1 %3673, %v3285_v7   ;;  %v333_v28 = vld [vmem:[%s4014_s19 + $0x158] sm:$0xff]  ;;  %v319_v30 = vld [vmem:[%s4014_s19 + $0xe8] sm:$0xff]  ;;  %v350_v31 = vld [vmem:[%s4014_s19 + $0x1e0] sm:$0xff]  ;;  %v3511_v34 = vpack.c.bf16 %v301_v26, %v300_v25 }
  0x28   : >> { %3495 = vmatpush3.bf16.xpose.msk.msra.mxu0 %vm4018_vm1, %v3493_v48  ;;  %v351_v32 = vld [vmem:[%s4014_s19 + $0x1e8] sm:$0xff]  ;;  %v3317_v33 = vld [vmem:[%s4634_s4 + $0x60] sm:$0xff]  ;;  %v3350_v35 = vld [vmem:[%s4634_s4 + $0x98] sm:$0xff]  ;;  %v3559_v36 = vpack.c.bf16 %v333_v28, %v332_v27  ;;  %v3514_v37 = vpack.c.bf16 %v319_v30, %v318_v29 }
  0x29   : >> { %3543 = vmatpush3.bf16.xpose.msk.msra.mxu1 %vm4018_vm1, %v3541_v50  ;;  %3498 = vmatprep.subr.msk.bf16.mxu0 %vm4018_vm1, %v3496_v51  ;;  %v3562_v38 = vpack.c.bf16 %v351_v32, %v350_v31  ;;  %v3319_v39 = vld [vmem:[%s4634_s4 + $0x70] sm:$0xf]  ;;  %v3365_v40 = vld [vmem:[%s4634_s4 + $0xa8] sm:$0xff]  ;;  %v302_v41 = vld [vmem:[%s4014_s19 + $0x60] sm:$0xff] }
  0x2a   : >> { %3546 = vmatprep.subr.msk.bf16.mxu1 %vm4018_vm1, %v3544_v52  ;;  %v303_v42 = vld [vmem:[%s4014_s19 + $0x68] sm:$0xff]  ;;  %v334_v43 = vld [vmem:[%s4014_s19 + $0x160] sm:$0xff]  ;;  %v320_v45 = vld [vmem:[%s4014_s19 + $0xf0] sm:$0xff] }
  0x2b   : >> { %1431 = vperm.xlu0 %3672, %v3301_v57   ;;  %1219 = vperm.xlu1 %3673, %v3287_v17   ;;  %v335_v44 = vld [vmem:[%s4014_s19 + $0x168] sm:$0xff]  ;;  %v321_v46 = vld [vmem:[%s4014_s19 + $0xf8] sm:$0xff]  ;;  %v352_v47 = vld [vmem:[%s4014_s19 + $0x1f0] sm:$0xff]  ;;  %v3517_v50 = vpack.c.bf16 %v303_v42, %v302_v41 }
  0x2c   : >> { %v353_v48 = vld [vmem:[%s4014_s19 + $0x1f8] sm:$0xff]  ;;  %v3334_v49 = vld [vmem:[%s4634_s4 + $0x80] sm:$0xff]  ;;  %v3565_v52 = vpack.c.bf16 %v335_v44, %v334_v43  ;;  %v3520_v53 = vpack.c.bf16 %v321_v46, %v320_v45  ;;  %v3349_v55 = vld [vmem:[%s4634_s4 + $0x90] sm:$0xff] }
  0x2d   : >> { %v3367_v51 = vld [vmem:[%s4634_s4 + $0xb8] sm:$0xf]  ;;  %v3568_v54 = vpack.c.bf16 %v353_v48, %v352_v47  ;;  %v3382_v56 = vld [vmem:[%s4634_s4 + $0xc8] sm:$0xff]  ;;  %v304_v57 = vld [vmem:[%s4014_s19 + $0x70] sm:$0xff] }
  0x2e   : >> { %v305_v58 = vld [vmem:[%s4014_s19 + $0x78] sm:$0xff]  ;;  %v336_v59 = vld [vmem:[%s4014_s19 + $0x170] sm:$0xff]  ;;  %v3351_v61 = vld [vmem:[%s4634_s4 + $0xa0] sm:$0xf] }
  0x2f   : >> { %1441 = vperm.xlu0 %3672, %v3303_v2   ;;  %1436 = vperm.xlu1 %3673, %v3302_v23   ;;  %v337_v60 = vld [vmem:[%s4014_s19 + $0x178] sm:$0xff]  ;;  %v3523_v62 = vpack.c.bf16 %v305_v58, %v304_v57  ;;  %v2754_v63 = vld [vmem:[%s4636_s6] sm:$0x3]  ;;  %v3366_v2 = vld [vmem:[%s4634_s4 + $0xb0] sm:$0xff] }
  0x30   : >> { %3501 = vmatpush3.bf16.xpose.msk.msra.mxu0 %vm4018_vm1, %v3499_v1  ;;  %v3571_v1 = vpack.c.bf16 %v337_v60, %v336_v59  ;;  %v356_v4 = vld [vmem:[%s4631_s1 + $0x10] sm:$0xf] }
  0x31   : >> { %3549 = vmatpush3.bf16.xpose.msk.msra.mxu1 %vm4018_vm1, %v3547_v3  ;;  %3504 = vmatprep.subr.msk.bf16.mxu0 %vm4018_vm1, %v3502_v5  ;;  %v3381_v3 = vld [vmem:[%s4634_s4 + $0xc0] sm:$0xff]  ;;  %v355_v5 = vld [vmem:[%s4631_s1 + $0x8] sm:$0xff] }
  0x32   : >> { %3552 = vmatprep.subr.msk.bf16.mxu1 %vm4018_vm1, %v3550_v6  ;;  %v3383_v6 = vld [vmem:[%s4634_s4 + $0xd0] sm:$0xf] }
  0x33   : >> { %1658 = vperm.xlu0 %3672, %v3318_v8   ;;  %1653 = vperm.xlu1 %3673, %v3317_v33  }
  0x37   : >> { %1875 = vperm.xlu0 %3672, %v3333_v19   ;;  %1663 = vperm.xlu1 %3673, %v3319_v39  }
  0x38   : >> { %3507 = vmatpush3.bf16.xpose.msk.msra.mxu0 %vm4018_vm1, %v3505_v18 }
  0x39   : >> { %3555 = vmatpush3.bf16.xpose.msk.msra.mxu1 %vm4018_vm1, %v3553_v20  ;;  %3510 = vmatprep.subr.msk.bf16.mxu0 %vm4018_vm1, %v3508_v21 }
  0x3a   : >> { %3558 = vmatprep.subr.msk.bf16.mxu1 %vm4018_vm1, %v3556_v22 }
  0x3b   : >> { %1885 = vperm.xlu0 %3672, %v3335_v24   ;;  %1880 = vperm.xlu1 %3673, %v3334_v49   ;;  %v755_v49 = vld [vmem:[%s4633_s3] sm:$0xff] }
  0x3f   : >> { %2102 = vperm.xlu0 %3672, %v3350_v35   ;;  %2097 = vperm.xlu1 %3673, %v3349_v55  }
  0x40   : >> { %3513 = vmatpush3.bf16.xpose.msk.msra.mxu0 %vm4018_vm1, %v3511_v34 }
  0x41   : >> { %3561 = vmatpush3.bf16.xpose.msk.msra.mxu1 %vm4018_vm1, %v3559_v36  ;;  %3516 = vmatprep.subr.msk.bf16.mxu0 %vm4018_vm1, %v3514_v37 }
  0x42   : >> { %3564 = vmatprep.subr.msk.bf16.mxu1 %vm4018_vm1, %v3562_v38 }
  0x43   : >> { %2319 = vperm.xlu0 %3672, %v3365_v40   ;;  %2107 = vperm.xlu1 %3673, %v3351_v61  }
  0x47   : >> { %2329 = vperm.xlu0 %3672, %v3367_v51   ;;  %2324 = vperm.xlu1 %3673, %v3366_v2   ;;  %v756_v51 = vld [vmem:[%s4633_s3 + $0x8] sm:$0xff] }
  0x48   : >> { %3519 = vmatpush3.bf16.xpose.msk.msra.mxu0 %vm4018_vm1, %v3517_v50 }
  0x49   : >> { %3567 = vmatpush3.bf16.xpose.msk.msra.mxu1 %vm4018_vm1, %v3565_v52  ;;  %3522 = vmatprep.subr.msk.bf16.mxu0 %vm4018_vm1, %v3520_v53  ;;  %v757_v52 = vld [vmem:[%s4633_s3 + $0x10] sm:$0xf] }
  0x4a   : >> { %3570 = vmatprep.subr.msk.bf16.mxu1 %vm4018_vm1, %v3568_v54 }
  0x4b   : >> { %2546 = vperm.xlu0 %3672, %v3382_v56   ;;  %2541 = vperm.xlu1 %3673, %v3381_v3  }
  0x4f   : >> { %2757 = vperm.xlu0 %3672, %v2754_v63   ;;  %2551 = vperm.xlu1 %3673, %v3383_v6  }
  0x50   : >> { %3525 = vmatpush3.bf16.xpose.msk.msra.mxu0 %vm4018_vm1, %v3523_v62 }
  0x51   : >> { %3573 = vmatpush3.bf16.xpose.msk.msra.mxu1 %vm4018_vm1, %v3571_v1 }
  0x57   : >> { %3435 = vmatmul.mubr.msk.f32.vlgmr.msra.gmra.mrb[0].mxu0 %vm375_vm0, %v3998_v0 }
  0x58   : >> { %3473 = vmatmul.mubr.msk.f32.vlgmr.msra.gmra.mrb[0].mxu1 %vm375_vm0, %v3998_v0  ;;  %3436 = vmatprep.mubr.msk.f32.mxu0 %vm375_vm0, %v355_v5  ;;  %v3931_v0 = vmov 0.0  }
  0x59   : >> { %3474 = vmatprep.mubr.msk.f32.mxu1 %vm375_vm0, %v355_v5 }
  0x5b   : >> { %3437 = vmatmul.mubr.msk.f32.gmra.mrb[2].mxu0 %vm375_vm0, %v355_v5 }
  0x5c   : >> { %3475 = vmatmul.mubr.msk.f32.gmra.mrb[2].mxu1 %vm375_vm0, %v355_v5  ;;  %3438 = vmatprep.mubr.msk.f32.mxu0 %vm375_vm0, %v356_v4 }
  0x5d   : >> { %3476 = vmatprep.mubr.msk.f32.mxu1 %vm375_vm0, %v356_v4 }
  0x5f   : >> { %3439 = vmatmul.mubr.msk.f32.gmra.mrb[4].mxu0 %vm375_vm0, %v356_v4 }
  0x60   : >> { %3477 = vmatmul.mubr.msk.f32.gmra.mrb[4].mxu1 %vm375_vm0, %v356_v4  ;;  %863 = vmatprep.mubr.f32.mxu0 %v3931_v0 }
  0x61   : >> { %946 = vmatprep.mubr.f32.mxu1 %v3931_v0 }
  0x92   : >> { %v363_v7 = vpop.permute.xlu0 %362  ;;  %v373_v25 = vpop.permute.xlu1 %372 }
  0x96   : >> { %v368_v16 = vpop.permute.xlu0 %367  ;;  %v764_v53 = vpop.permute.xlu1 %763 }
  0x9a   : >> { %v769_v62 = vpop.permute.xlu0 %768 }
 0x12a   : >> { %v643_v8 = vpop.f32.mrb[0].mxu0 }
 0x12b   : >> { %v644_v9 = vadd.f32 %v643_v8, %v363_v7  ;;  %v726_v10 = vpop.f32.mrb[0].mxu1  ;;  %v645_v11 = vpop.f32.mrb[1].mxu0 }
 0x12c   : >> { %v727_v12 = vadd.f32 %v726_v10, %v363_v7  ;;  %v646_v13 = vadd.f32 %v645_v11, %v363_v7  ;;  %v728_v14 = vpop.f32.mrb[1].mxu1  ;;  %v774_v8 = vpop.permute.xlu1 %773 }
 0x12d   : >> { %3674 = vtanh.f32 %v644_v9  ;;  %v729_v15 = vadd.f32 %v728_v14, %v363_v7 }
 0x12e   : >> { %3676 = vtanh.f32 %v727_v12  ;;  %v649_v17 = vpop.f32.mrb[2].mxu0 }
 0x12f   : >> { %3678 = vtanh.f32 %v646_v13  ;;  %v650_v18 = vadd.f32 %v649_v17, %v368_v16  ;;  %v732_v19 = vpop.f32.mrb[2].mxu1  ;;  %v651_v20 = vpop.f32.mrb[3].mxu0 }
 0x130   : >> { %3680 = vtanh.f32 %v729_v15  ;;  %v733_v21 = vadd.f32 %v732_v19, %v368_v16  ;;  %v652_v22 = vadd.f32 %v651_v20, %v368_v16  ;;  %v734_v23 = vpop.f32.mrb[3].mxu1 }
 0x131   : >> { %3682 = vtanh.f32 %v650_v18  ;;  %v735_v24 = vadd.f32 %v734_v23, %v368_v16 }
 0x132   : >> { %3684 = vtanh.f32 %v733_v21  ;;  %v655_v26 = vpop.f32.mrb[4].mxu0 }
 0x133   : >> { %3686 = vtanh.f32 %v652_v22  ;;  %v657_v27 = vpop.f32.mrb[5].mxu0  ;;  %v738_v28 = vpop.f32.mrb[4].mxu1  ;;  %v656_v33 = vadd.f32 %v655_v26, %v373_v25 }
 0x134   : >> { %3688 = vtanh.f32 %v735_v24  ;;  %v658_v29 = vadd.f32 %v657_v27, %v373_v25  ;;  %v740_v30 = vpop.f32.mrb[5].mxu1  ;;  %v739_v31 = vadd.f32 %v738_v28, %v373_v25 }
 0x135   : >> { %v741_v32 = vadd.f32 %v740_v30, %v373_v25 }
 0x136   : >> { %3690 = vtanh.f32 %v658_v29 }
 0x137   : >> { %v3675_v34 = vpop.eup %3674  ;;  %3692 = vtanh.f32 %v741_v32 }
 0x138   : >> { %v3677_v35 = vpop.eup %3676  ;;  %3694 = vtanh.f32 %v739_v31  ;;  %v3266_v31 = vld [vmem:[%s4633_s3 + $0x18] sm:$0xff] }
 0x139   : >> { %v3679_v36 = vpop.eup %3678  ;;  %3696 = vtanh.f32 %v656_v33 }
 0x13a   : >> { %v3681_v37 = vpop.eup %3680 }
 0x13b   : >> { %v3683_v38 = vpop.eup %3682 }
 0x13c   : >> { %v3685_v39 = vpop.eup %3684  ;;  %v3576_v40 = vpack.c.bf16 %v3683_v38, %v3675_v34  ;;  %v3267_v34 = vld [vmem:[%s4633_s3 + $0x20] sm:$0xff] }
 0x13d   : >> { %v3687_v41 = vpop.eup %3686  ;;  %v3580_v42 = vpack.c.bf16 %v3685_v39, %v3677_v35  ;;  %v3268_v35 = vld [vmem:[%s4633_s3 + $0x28] sm:$0xf] }
 0x13e   : >> { %v3689_v43 = vpop.eup %3688  ;;  %v3574_v44 = vpack.c.bf16 %v3687_v41, %v3679_v36  ;;  %v988_v36 = vpop.permute.xlu0 %987 }
 0x13f   : >> { %v3578_v45 = vpack.c.bf16 %v3689_v43, %v3681_v37 }
 0x140   : >> { %v3691_v46 = vpop.eup %3690  ;;  %3575 = vmatprep.subr.bf16.mxu0 %v3574_v44 }
 0x141   : >> { %3579 = vmatprep.subr.bf16.mxu1 %v3578_v45  ;;  %3577 = vmatpush1.bf16.msra.mxu0 %v3576_v40  ;;  %v3693_v47 = vpop.eup %3692  ;;  %v993_v45 = vpop.permute.xlu1 %992 }
 0x142   : >> { %3581 = vmatpush1.bf16.msra.mxu1 %v3580_v42  ;;  %3256 = vmatprep.subr.msk.mxu0 %vm786_vm2, %v3691_v46  ;;  %v3695_v48 = vpop.eup %3694 }
 0x143   : >> { %3261 = vmatprep.subr.msk.mxu1 %vm786_vm2, %v3693_v47  ;;  %v3697_v50 = vpop.eup %3696 }
 0x145   : >> { %3257 = vmatpush1.msk.msra.mxu0 %vm786_vm2, %v3697_v50 }
 0x146   : >> { %3262 = vmatpush1.msk.msra.mxu1 %vm786_vm2, %v3695_v48  ;;  %3258 = vmatmul.mubr.msk.f32.vlgmr.msra.gmra.mrb[6].mxu0 %vm776_vm3, %v755_v49 }
 0x147   : >> { %3263 = vmatmul.mubr.msk.f32.vlgmr.msra.gmra.mrb[6].mxu1 %vm776_vm3, %v755_v49  ;;  %869 = vmatprep.mubr.f32.mxu0 %v3931_v0 }
 0x148   : >> { %952 = vmatprep.mubr.f32.mxu1 %v3931_v0 }
 0x14a   : >> { %3259 = vmatmul.mubr.msk.f32.gmra.mrb[8].mxu0 %vm776_vm3, %v756_v51 }
 0x14b   : >> { %3264 = vmatmul.mubr.msk.f32.gmra.mrb[8].mxu1 %vm776_vm3, %v756_v51  ;;  %875 = vmatprep.mubr.f32.mxu0 %v3931_v0 }
 0x14c   : >> { %958 = vmatprep.mubr.f32.mxu1 %v3931_v0 }
 0x14e   : >> { %3260 = vmatmul.mubr.msk.f32.gmra.mrb[10].mxu0 %vm776_vm3, %v757_v52 }
 0x14f   : >> { %3265 = vmatmul.mubr.msk.f32.gmra.mrb[10].mxu1 %vm776_vm3, %v757_v52  ;;  %1085 = vmatprep.mubr.f32.mxu0 %v3931_v0 }
 0x150   : >> { %1168 = vmatprep.mubr.f32.mxu1 %v3931_v0 }
 0x219   : >> { %v865_v54 = vpop.f32.mrb[6].mxu0 }
 0x21a   : >> { %v866_v55 = vadd.f32 %v865_v54, %v764_v53  ;;  %v948_v56 = vpop.f32.mrb[6].mxu1  ;;  %v867_v57 = vpop.f32.mrb[7].mxu0 }
 0x21b   : >> { %v949_v58 = vadd.f32 %v948_v56, %v764_v53  ;;  %v868_v59 = vadd.f32 %v867_v57, %v764_v53  ;;  %v950_v60 = vpop.f32.mrb[7].mxu1  ;;  %v998_v54 = vpop.permute.xlu0 %997 }
 0x21c   : >> { %3698 = vtanh.f32 %v866_v55  ;;  %v951_v61 = vadd.f32 %v950_v60, %v764_v53 }
 0x21d   : >> { %3700 = vtanh.f32 %v949_v58  ;;  %v871_v63 = vpop.f32.mrb[8].mxu0 }
 0x21e   : >> { %3702 = vtanh.f32 %v868_v59  ;;  %v872_v1 = vadd.f32 %v871_v63, %v769_v62  ;;  %v954_v2 = vpop.f32.mrb[8].mxu1  ;;  %v873_v3 = vpop.f32.mrb[9].mxu0 }
 0x21f   : >> { %3704 = vtanh.f32 %v951_v61  ;;  %v955_v5 = vadd.f32 %v954_v2, %v769_v62  ;;  %v874_v6 = vadd.f32 %v873_v3, %v769_v62  ;;  %v956_v4 = vpop.f32.mrb[9].mxu1 }
 0x220   : >> { %3706 = vtanh.f32 %v872_v1  ;;  %v957_v7 = vadd.f32 %v956_v4, %v769_v62 }
 0x221   : >> { %3708 = vtanh.f32 %v955_v5  ;;  %v877_v9 = vpop.f32.mrb[10].mxu0 }
 0x222   : >> { %3710 = vtanh.f32 %v874_v6  ;;  %v960_v10 = vpop.f32.mrb[10].mxu1  ;;  %v879_v11 = vpop.f32.mrb[11].mxu0  ;;  %v878_v15 = vadd.f32 %v877_v9, %v774_v8 }
 0x223   : >> { %3712 = vtanh.f32 %v957_v7  ;;  %v880_v12 = vadd.f32 %v879_v11, %v774_v8  ;;  %v962_v13 = vpop.f32.mrb[11].mxu1  ;;  %v961_v17 = vadd.f32 %v960_v10, %v774_v8 }
 0x224   : >> { %v963_v14 = vadd.f32 %v962_v13, %v774_v8 }
 0x225   : >> { %3714 = vtanh.f32 %v880_v12 }
 0x226   : >> { %v3699_v16 = vpop.eup %3698  ;;  %3716 = vtanh.f32 %v963_v14  ;;  %v3282_v14 = vld [vmem:[%s4633_s3 + $0x30] sm:$0xff] }
 0x227   : >> { %v3701_v18 = vpop.eup %3700  ;;  %3718 = vtanh.f32 %v878_v15 }
 0x228   : >> { %v3703_v19 = vpop.eup %3702  ;;  %3720 = vtanh.f32 %v961_v17  ;;  %v3283_v17 = vld [vmem:[%s4633_s3 + $0x38] sm:$0xff] }
 0x229   : >> { %v3705_v20 = vpop.eup %3704 }
 0x22a   : >> { %v3707_v21 = vpop.eup %3706 }
 0x22b   : >> { %v3709_v22 = vpop.eup %3708  ;;  %v3584_v23 = vpack.c.bf16 %v3707_v21, %v3699_v16 }
 0x22c   : >> { %v3711_v24 = vpop.eup %3710  ;;  %v3588_v25 = vpack.c.bf16 %v3709_v22, %v3701_v18  ;;  %v3284_v18 = vld [vmem:[%s4633_s3 + $0x40] sm:$0xf] }
 0x22d   : >> { %v3713_v26 = vpop.eup %3712  ;;  %v3582_v27 = vpack.c.bf16 %v3711_v24, %v3703_v19  ;;  %v1210_v19 = vpop.permute.xlu1 %1209 }
 0x22e   : >> { %v3586_v28 = vpack.c.bf16 %v3713_v26, %v3705_v20 }
 0x22f   : >> { %3583 = vmatprep.subr.bf16.mxu0 %v3582_v27  ;;  %v3715_v29 = vpop.eup %3714 }
 0x230   : >> { %3587 = vmatprep.subr.bf16.mxu1 %v3586_v28  ;;  %3585 = vmatpush1.bf16.msra.mxu0 %v3584_v23  ;;  %v3717_v30 = vpop.eup %3716  ;;  %v1215_v28 = vpop.permute.xlu0 %1214 }
 0x231   : >> { %3589 = vmatpush1.bf16.msra.mxu1 %v3588_v25  ;;  %3272 = vmatprep.subr.msk.mxu0 %vm786_vm2, %v3715_v29  ;;  %v3719_v32 = vpop.eup %3718 }
 0x232   : >> { %3277 = vmatprep.subr.msk.mxu1 %vm786_vm2, %v3717_v30  ;;  %v3721_v33 = vpop.eup %3720 }
 0x234   : >> { %3273 = vmatpush1.msk.msra.mxu0 %vm786_vm2, %v3719_v32 }
 0x235   : >> { %3278 = vmatpush1.msk.msra.mxu1 %vm786_vm2, %v3721_v33  ;;  %3274 = vmatmul.mubr.msk.f32.vlgmr.msra.gmra.mrb[12].mxu0 %vm776_vm3, %v3266_v31 }
 0x236   : >> { %3279 = vmatmul.mubr.msk.f32.vlgmr.msra.gmra.mrb[12].mxu1 %vm776_vm3, %v3266_v31  ;;  %1091 = vmatprep.mubr.f32.mxu0 %v3931_v0 }
 0x237   : >> { %1174 = vmatprep.mubr.f32.mxu1 %v3931_v0 }
 0x239   : >> { %3275 = vmatmul.mubr.msk.f32.gmra.mrb[14].mxu0 %vm776_vm3, %v3267_v34 }
 0x23a   : >> { %3280 = vmatmul.mubr.msk.f32.gmra.mrb[14].mxu1 %vm776_vm3, %v3267_v34  ;;  %1097 = vmatprep.mubr.f32.mxu0 %v3931_v0 }
 0x23b   : >> { %1180 = vmatprep.mubr.f32.mxu1 %v3931_v0 }
 0x23d   : >> { %3276 = vmatmul.mubr.msk.f32.gmra.mrb[16].mxu0 %vm776_vm3, %v3268_v35 }
 0x23e   : >> { %3281 = vmatmul.mubr.msk.f32.gmra.mrb[16].mxu1 %vm776_vm3, %v3268_v35  ;;  %1307 = vmatprep.mubr.f32.mxu0 %v3931_v0 }
 0x23f   : >> { %1390 = vmatprep.mubr.f32.mxu1 %v3931_v0 }
 0x308   : >> { %v1087_v37 = vpop.f32.mrb[12].mxu0 }
 0x309   : >> { %v1088_v38 = vadd.f32 %v1087_v37, %v988_v36  ;;  %v1170_v39 = vpop.f32.mrb[12].mxu1  ;;  %v1089_v40 = vpop.f32.mrb[13].mxu0 }
 0x30a   : >> { %v1171_v41 = vadd.f32 %v1170_v39, %v988_v36  ;;  %v1090_v42 = vadd.f32 %v1089_v40, %v988_v36  ;;  %v1172_v43 = vpop.f32.mrb[13].mxu1  ;;  %v1220_v37 = vpop.permute.xlu1 %1219 }
 0x30b   : >> { %3722 = vtanh.f32 %v1088_v38  ;;  %v1173_v44 = vadd.f32 %v1172_v43, %v988_v36 }
 0x30c   : >> { %3724 = vtanh.f32 %v1171_v41  ;;  %v1093_v46 = vpop.f32.mrb[14].mxu0 }
 0x30d   : >> { %3726 = vtanh.f32 %v1090_v42  ;;  %v1094_v47 = vadd.f32 %v1093_v46, %v993_v45  ;;  %v1176_v48 = vpop.f32.mrb[14].mxu1  ;;  %v1095_v49 = vpop.f32.mrb[15].mxu0 }
 0x30e   : >> { %3728 = vtanh.f32 %v1173_v44  ;;  %v1177_v50 = vadd.f32 %v1176_v48, %v993_v45  ;;  %v1096_v51 = vadd.f32 %v1095_v49, %v993_v45  ;;  %v1178_v52 = vpop.f32.mrb[15].mxu1 }
 0x30f   : >> { %3730 = vtanh.f32 %v1094_v47  ;;  %v1179_v53 = vadd.f32 %v1178_v52, %v993_v45 }
 0x310   : >> { %3732 = vtanh.f32 %v1177_v50  ;;  %v1099_v55 = vpop.f32.mrb[16].mxu0 }
 0x311   : >> { %3734 = vtanh.f32 %v1096_v51  ;;  %v1182_v56 = vpop.f32.mrb[16].mxu1  ;;  %v1101_v57 = vpop.f32.mrb[17].mxu0  ;;  %v1100_v61 = vadd.f32 %v1099_v55, %v998_v54 }
 0x312   : >> { %3736 = vtanh.f32 %v1179_v53  ;;  %v1102_v58 = vadd.f32 %v1101_v57, %v998_v54  ;;  %v1184_v59 = vpop.f32.mrb[17].mxu1  ;;  %v1183_v63 = vadd.f32 %v1182_v56, %v998_v54 }
 0x313   : >> { %v1185_v60 = vadd.f32 %v1184_v59, %v998_v54 }
 0x314   : >> { %3738 = vtanh.f32 %v1102_v58 }
 0x315   : >> { %v3723_v62 = vpop.eup %3722  ;;  %3740 = vtanh.f32 %v1185_v60  ;;  %v3298_v60 = vld [vmem:[%s4633_s3 + $0x48] sm:$0xff] }
 0x316   : >> { %v3725_v1 = vpop.eup %3724  ;;  %3742 = vtanh.f32 %v1100_v61 }
 0x317   : >> { %v3727_v2 = vpop.eup %3726  ;;  %3744 = vtanh.f32 %v1183_v63  ;;  %v3299_v63 = vld [vmem:[%s4633_s3 + $0x50] sm:$0xff] }
 0x318   : >> { %v3729_v3 = vpop.eup %3728 }
 0x319   : >> { %v3731_v5 = vpop.eup %3730 }
 0x31a   : >> { %v3733_v6 = vpop.eup %3732  ;;  %v3592_v4 = vpack.c.bf16 %v3731_v5, %v3723_v62 }
 0x31b   : >> { %v3735_v7 = vpop.eup %3734  ;;  %v3596_v8 = vpack.c.bf16 %v3733_v6, %v3725_v1  ;;  %v3300_v1 = vld [vmem:[%s4633_s3 + $0x58] sm:$0xf] }
 0x31c   : >> { %v3737_v9 = vpop.eup %3736  ;;  %v3590_v10 = vpack.c.bf16 %v3735_v7, %v3727_v2  ;;  %v1432_v2 = vpop.permute.xlu0 %1431 }
 0x31d   : >> { %v3594_v11 = vpack.c.bf16 %v3737_v9, %v3729_v3 }
 0x31e   : >> { %3591 = vmatprep.subr.bf16.mxu0 %v3590_v10  ;;  %v3739_v12 = vpop.eup %3738 }
 0x31f   : >> { %3595 = vmatprep.subr.bf16.mxu1 %v3594_v11  ;;  %3593 = vmatpush1.bf16.msra.mxu0 %v3592_v4  ;;  %v3741_v13 = vpop.eup %3740  ;;  %v1437_v11 = vpop.permute.xlu1 %1436 }
 0x320   : >> { %3597 = vmatpush1.bf16.msra.mxu1 %v3596_v8  ;;  %3288 = vmatprep.subr.msk.mxu0 %vm786_vm2, %v3739_v12  ;;  %v3743_v15 = vpop.eup %3742 }
 0x321   : >> { %3293 = vmatprep.subr.msk.mxu1 %vm786_vm2, %v3741_v13  ;;  %v3745_v16 = vpop.eup %3744 }
 0x323   : >> { %3289 = vmatpush1.msk.msra.mxu0 %vm786_vm2, %v3743_v15 }
 0x324   : >> { %3294 = vmatpush1.msk.msra.mxu1 %vm786_vm2, %v3745_v16  ;;  %3290 = vmatmul.mubr.msk.f32.vlgmr.msra.gmra.mrb[18].mxu0 %vm776_vm3, %v3282_v14 }
 0x325   : >> { %3295 = vmatmul.mubr.msk.f32.vlgmr.msra.gmra.mrb[18].mxu1 %vm776_vm3, %v3282_v14  ;;  %1313 = vmatprep.mubr.f32.mxu0 %v3931_v0 }
 0x326   : >> { %1396 = vmatprep.mubr.f32.mxu1 %v3931_v0 }
 0x328   : >> { %3291 = vmatmul.mubr.msk.f32.gmra.mrb[20].mxu0 %vm776_vm3, %v3283_v17 }
 0x329   : >> { %3296 = vmatmul.mubr.msk.f32.gmra.mrb[20].mxu1 %vm776_vm3, %v3283_v17  ;;  %1319 = vmatprep.mubr.f32.mxu0 %v3931_v0 }
 0x32a   : >> { %1402 = vmatprep.mubr.f32.mxu1 %v3931_v0 }
 0x32c   : >> { %3292 = vmatmul.mubr.msk.f32.gmra.mrb[22].mxu0 %vm776_vm3, %v3284_v18 }
 0x32d   : >> { %3297 = vmatmul.mubr.msk.f32.gmra.mrb[22].mxu1 %vm776_vm3, %v3284_v18  ;;  %1529 = vmatprep.mubr.f32.mxu0 %v3931_v0 }
 0x32e   : >> { %1612 = vmatprep.mubr.f32.mxu1 %v3931_v0 }
 0x3f7   : >> { %v1309_v20 = vpop.f32.mrb[18].mxu0 }
 0x3f8   : >> { %v1310_v21 = vadd.f32 %v1309_v20, %v1210_v19  ;;  %v1392_v22 = vpop.f32.mrb[18].mxu1  ;;  %v1311_v23 = vpop.f32.mrb[19].mxu0 }
 0x3f9   : >> { %v1393_v24 = vadd.f32 %v1392_v22, %v1210_v19  ;;  %v1312_v25 = vadd.f32 %v1311_v23, %v1210_v19  ;;  %v1394_v26 = vpop.f32.mrb[19].mxu1  ;;  %v1442_v20 = vpop.permute.xlu0 %1441 }
 0x3fa   : >> { %3746 = vtanh.f32 %v1310_v21  ;;  %v1395_v27 = vadd.f32 %v1394_v26, %v1210_v19 }
 0x3fb   : >> { %3748 = vtanh.f32 %v1393_v24  ;;  %v1315_v29 = vpop.f32.mrb[20].mxu0 }
 0x3fc   : >> { %3750 = vtanh.f32 %v1312_v25  ;;  %v1316_v30 = vadd.f32 %v1315_v29, %v1215_v28  ;;  %v1398_v31 = vpop.f32.mrb[20].mxu1  ;;  %v1317_v32 = vpop.f32.mrb[21].mxu0 }
 0x3fd   : >> { %3752 = vtanh.f32 %v1395_v27  ;;  %v1399_v33 = vadd.f32 %v1398_v31, %v1215_v28  ;;  %v1318_v34 = vadd.f32 %v1317_v32, %v1215_v28  ;;  %v1400_v35 = vpop.f32.mrb[21].mxu1 }
 0x3fe   : >> { %3754 = vtanh.f32 %v1316_v30  ;;  %v1401_v36 = vadd.f32 %v1400_v35, %v1215_v28 }
 0x3ff   : >> { %3756 = vtanh.f32 %v1399_v33  ;;  %v1321_v38 = vpop.f32.mrb[22].mxu0 }
 0x400   : >> { %3758 = vtanh.f32 %v1318_v34  ;;  %v1404_v39 = vpop.f32.mrb[22].mxu1  ;;  %v1323_v40 = vpop.f32.mrb[23].mxu0  ;;  %v1322_v44 = vadd.f32 %v1321_v38, %v1220_v37 }
 0x401   : >> { %3760 = vtanh.f32 %v1401_v36  ;;  %v1324_v41 = vadd.f32 %v1323_v40, %v1220_v37  ;;  %v1406_v42 = vpop.f32.mrb[23].mxu1  ;;  %v1405_v46 = vadd.f32 %v1404_v39, %v1220_v37 }
 0x402   : >> { %v1407_v43 = vadd.f32 %v1406_v42, %v1220_v37 }
 0x403   : >> { %3762 = vtanh.f32 %v1324_v41 }
 0x404   : >> { %v3747_v45 = vpop.eup %3746  ;;  %3764 = vtanh.f32 %v1407_v43  ;;  %v3314_v43 = vld [vmem:[%s4633_s3 + $0x60] sm:$0xff] }
 0x405   : >> { %v3749_v47 = vpop.eup %3748  ;;  %3766 = vtanh.f32 %v1322_v44 }
 0x406   : >> { %v3751_v48 = vpop.eup %3750  ;;  %3768 = vtanh.f32 %v1405_v46  ;;  %v3315_v46 = vld [vmem:[%s4633_s3 + $0x68] sm:$0xff] }
 0x407   : >> { %v3753_v49 = vpop.eup %3752 }
 0x408   : >> { %v3755_v50 = vpop.eup %3754 }
 0x409   : >> { %v3757_v51 = vpop.eup %3756  ;;  %v3600_v52 = vpack.c.bf16 %v3755_v50, %v3747_v45 }
 0x40a   : >> { %v3759_v53 = vpop.eup %3758  ;;  %v3604_v54 = vpack.c.bf16 %v3757_v51, %v3749_v47  ;;  %v3316_v47 = vld [vmem:[%s4633_s3 + $0x70] sm:$0xf] }
 0x40b   : >> { %v3761_v55 = vpop.eup %3760  ;;  %v3598_v56 = vpack.c.bf16 %v3759_v53, %v3751_v48  ;;  %v1654_v48 = vpop.permute.xlu1 %1653 }
 0x40c   : >> { %v3602_v57 = vpack.c.bf16 %v3761_v55, %v3753_v49 }
 0x40d   : >> { %3599 = vmatprep.subr.bf16.mxu0 %v3598_v56  ;;  %v3763_v58 = vpop.eup %3762 }
 0x40e   : >> { %3603 = vmatprep.subr.bf16.mxu1 %v3602_v57  ;;  %3601 = vmatpush1.bf16.msra.mxu0 %v3600_v52  ;;  %v3765_v59 = vpop.eup %3764  ;;  %v1659_v57 = vpop.permute.xlu0 %1658 }
 0x40f   : >> { %3605 = vmatpush1.bf16.msra.mxu1 %v3604_v54  ;;  %3304 = vmatprep.subr.msk.mxu0 %vm786_vm2, %v3763_v58  ;;  %v3767_v61 = vpop.eup %3766 }
 0x410   : >> { %3309 = vmatprep.subr.msk.mxu1 %vm786_vm2, %v3765_v59  ;;  %v3769_v62 = vpop.eup %3768 }
 0x412   : >> { %3305 = vmatpush1.msk.msra.mxu0 %vm786_vm2, %v3767_v61 }
 0x413   : >> { %3310 = vmatpush1.msk.msra.mxu1 %vm786_vm2, %v3769_v62  ;;  %3306 = vmatmul.mubr.msk.f32.vlgmr.msra.gmra.mrb[24].mxu0 %vm776_vm3, %v3298_v60 }
 0x414   : >> { %3311 = vmatmul.mubr.msk.f32.vlgmr.msra.gmra.mrb[24].mxu1 %vm776_vm3, %v3298_v60  ;;  %1535 = vmatprep.mubr.f32.mxu0 %v3931_v0 }
 0x415   : >> { %1618 = vmatprep.mubr.f32.mxu1 %v3931_v0 }
 0x417   : >> { %3307 = vmatmul.mubr.msk.f32.gmra.mrb[26].mxu0 %vm776_vm3, %v3299_v63 }
 0x418   : >> { %3312 = vmatmul.mubr.msk.f32.gmra.mrb[26].mxu1 %vm776_vm3, %v3299_v63  ;;  %1541 = vmatprep.mubr.f32.mxu0 %v3931_v0 }
 0x419   : >> { %1624 = vmatprep.mubr.f32.mxu1 %v3931_v0 }
 0x41b   : >> { %3308 = vmatmul.mubr.msk.f32.gmra.mrb[28].mxu0 %vm776_vm3, %v3300_v1 }
 0x41c   : >> { %3313 = vmatmul.mubr.msk.f32.gmra.mrb[28].mxu1 %vm776_vm3, %v3300_v1  ;;  %1751 = vmatprep.mubr.f32.mxu0 %v3931_v0 }
 0x41d   : >> { %1834 = vmatprep.mubr.f32.mxu1 %v3931_v0 }
 0x4e6   : >> { %v1531_v3 = vpop.f32.mrb[24].mxu0 }
 0x4e7   : >> { %v1532_v5 = vadd.f32 %v1531_v3, %v1432_v2  ;;  %v1614_v6 = vpop.f32.mrb[24].mxu1  ;;  %v1533_v4 = vpop.f32.mrb[25].mxu0 }
 0x4e8   : >> { %v1615_v7 = vadd.f32 %v1614_v6, %v1432_v2  ;;  %v1534_v8 = vadd.f32 %v1533_v4, %v1432_v2  ;;  %v1616_v9 = vpop.f32.mrb[25].mxu1  ;;  %v1664_v3 = vpop.permute.xlu1 %1663 }
 0x4e9   : >> { %3770 = vtanh.f32 %v1532_v5  ;;  %v1617_v10 = vadd.f32 %v1616_v9, %v1432_v2 }
 0x4ea   : >> { %3772 = vtanh.f32 %v1615_v7  ;;  %v1537_v12 = vpop.f32.mrb[26].mxu0 }
 0x4eb   : >> { %3774 = vtanh.f32 %v1534_v8  ;;  %v1538_v13 = vadd.f32 %v1537_v12, %v1437_v11  ;;  %v1620_v14 = vpop.f32.mrb[26].mxu1  ;;  %v1539_v15 = vpop.f32.mrb[27].mxu0 }
 0x4ec   : >> { %3776 = vtanh.f32 %v1617_v10  ;;  %v1621_v16 = vadd.f32 %v1620_v14, %v1437_v11  ;;  %v1540_v17 = vadd.f32 %v1539_v15, %v1437_v11  ;;  %v1622_v18 = vpop.f32.mrb[27].mxu1 }
 0x4ed   : >> { %3778 = vtanh.f32 %v1538_v13  ;;  %v1623_v19 = vadd.f32 %v1622_v18, %v1437_v11 }
 0x4ee   : >> { %3780 = vtanh.f32 %v1621_v16  ;;  %v1543_v21 = vpop.f32.mrb[28].mxu0 }
 0x4ef   : >> { %3782 = vtanh.f32 %v1540_v17  ;;  %v1626_v22 = vpop.f32.mrb[28].mxu1  ;;  %v1545_v23 = vpop.f32.mrb[29].mxu0  ;;  %v1544_v27 = vadd.f32 %v1543_v21, %v1442_v20 }
 0x4f0   : >> { %3784 = vtanh.f32 %v1623_v19  ;;  %v1546_v24 = vadd.f32 %v1545_v23, %v1442_v20  ;;  %v1628_v25 = vpop.f32.mrb[29].mxu1  ;;  %v1627_v29 = vadd.f32 %v1626_v22, %v1442_v20 }
 0x4f1   : >> { %v1629_v26 = vadd.f32 %v1628_v25, %v1442_v20 }
 0x4f2   : >> { %3786 = vtanh.f32 %v1546_v24 }
 0x4f3   : >> { %v3771_v28 = vpop.eup %3770  ;;  %3788 = vtanh.f32 %v1629_v26  ;;  %v3330_v26 = vld [vmem:[%s4633_s3 + $0x78] sm:$0xff] }
 0x4f4   : >> { %v3773_v30 = vpop.eup %3772  ;;  %3790 = vtanh.f32 %v1544_v27 }
 0x4f5   : >> { %v3775_v31 = vpop.eup %3774  ;;  %3792 = vtanh.f32 %v1627_v29  ;;  %v3331_v29 = vld [vmem:[%s4633_s3 + $0x80] sm:$0xff] }
 0x4f6   : >> { %v3777_v32 = vpop.eup %3776 }
 0x4f7   : >> { %v3779_v33 = vpop.eup %3778 }
 0x4f8   : >> { %v3781_v34 = vpop.eup %3780  ;;  %v3608_v35 = vpack.c.bf16 %v3779_v33, %v3771_v28 }
 0x4f9   : >> { %v3783_v36 = vpop.eup %3782  ;;  %v3612_v37 = vpack.c.bf16 %v3781_v34, %v3773_v30  ;;  %v3332_v30 = vld [vmem:[%s4633_s3 + $0x88] sm:$0xf] }
 0x4fa   : >> { %v3785_v38 = vpop.eup %3784  ;;  %v3606_v39 = vpack.c.bf16 %v3783_v36, %v3775_v31  ;;  %v1876_v31 = vpop.permute.xlu0 %1875 }
 0x4fb   : >> { %v3610_v40 = vpack.c.bf16 %v3785_v38, %v3777_v32 }
 0x4fc   : >> { %3607 = vmatprep.subr.bf16.mxu0 %v3606_v39  ;;  %v3787_v41 = vpop.eup %3786 }
 0x4fd   : >> { %3611 = vmatprep.subr.bf16.mxu1 %v3610_v40  ;;  %3609 = vmatpush1.bf16.msra.mxu0 %v3608_v35  ;;  %v3789_v42 = vpop.eup %3788  ;;  %v1881_v40 = vpop.permute.xlu1 %1880 }
 0x4fe   : >> { %3613 = vmatpush1.bf16.msra.mxu1 %v3612_v37  ;;  %3320 = vmatprep.subr.msk.mxu0 %vm786_vm2, %v3787_v41  ;;  %v3791_v44 = vpop.eup %3790 }
 0x4ff   : >> { %3325 = vmatprep.subr.msk.mxu1 %vm786_vm2, %v3789_v42  ;;  %v3793_v45 = vpop.eup %3792 }
 0x501   : >> { %3321 = vmatpush1.msk.msra.mxu0 %vm786_vm2, %v3791_v44 }
 0x502   : >> { %3326 = vmatpush1.msk.msra.mxu1 %vm786_vm2, %v3793_v45  ;;  %3322 = vmatmul.mubr.msk.f32.vlgmr.msra.gmra.mrb[30].mxu0 %vm776_vm3, %v3314_v43 }
 0x503   : >> { %3327 = vmatmul.mubr.msk.f32.vlgmr.msra.gmra.mrb[30].mxu1 %vm776_vm3, %v3314_v43  ;;  %1757 = vmatprep.mubr.f32.mxu0 %v3931_v0 }
 0x504   : >> { %1840 = vmatprep.mubr.f32.mxu1 %v3931_v0 }
 0x506   : >> { %3323 = vmatmul.mubr.msk.f32.gmra.mrb[32].mxu0 %vm776_vm3, %v3315_v46 }
 0x507   : >> { %3328 = vmatmul.mubr.msk.f32.gmra.mrb[32].mxu1 %vm776_vm3, %v3315_v46  ;;  %1763 = vmatprep.mubr.f32.mxu0 %v3931_v0 }
 0x508   : >> { %1846 = vmatprep.mubr.f32.mxu1 %v3931_v0 }
 0x50a   : >> { %3324 = vmatmul.mubr.msk.f32.gmra.mrb[34].mxu0 %vm776_vm3, %v3316_v47 }
 0x50b   : >> { %3329 = vmatmul.mubr.msk.f32.gmra.mrb[34].mxu1 %vm776_vm3, %v3316_v47  ;;  %1973 = vmatprep.mubr.f32.mxu0 %v3931_v0 }
 0x50c   : >> { %2056 = vmatprep.mubr.f32.mxu1 %v3931_v0 }
 0x5d5   : >> { %v1753_v49 = vpop.f32.mrb[30].mxu0 }
 0x5d6   : >> { %v1754_v50 = vadd.f32 %v1753_v49, %v1654_v48  ;;  %v1836_v51 = vpop.f32.mrb[30].mxu1  ;;  %v1755_v52 = vpop.f32.mrb[31].mxu0 }
 0x5d7   : >> { %v1837_v53 = vadd.f32 %v1836_v51, %v1654_v48  ;;  %v1756_v54 = vadd.f32 %v1755_v52, %v1654_v48  ;;  %v1838_v55 = vpop.f32.mrb[31].mxu1  ;;  %v1886_v49 = vpop.permute.xlu0 %1885 }
 0x5d8   : >> { %3794 = vtanh.f32 %v1754_v50  ;;  %v1839_v56 = vadd.f32 %v1838_v55, %v1654_v48 }
 0x5d9   : >> { %3796 = vtanh.f32 %v1837_v53  ;;  %v1759_v58 = vpop.f32.mrb[32].mxu0 }
 0x5da   : >> { %3798 = vtanh.f32 %v1756_v54  ;;  %v1760_v59 = vadd.f32 %v1759_v58, %v1659_v57  ;;  %v1842_v60 = vpop.f32.mrb[32].mxu1  ;;  %v1761_v61 = vpop.f32.mrb[33].mxu0 }
 0x5db   : >> { %3800 = vtanh.f32 %v1839_v56  ;;  %v1843_v62 = vadd.f32 %v1842_v60, %v1659_v57  ;;  %v1762_v63 = vadd.f32 %v1761_v61, %v1659_v57  ;;  %v1844_v1 = vpop.f32.mrb[33].mxu1 }
 0x5dc   : >> { %3802 = vtanh.f32 %v1760_v59  ;;  %v1845_v2 = vadd.f32 %v1844_v1, %v1659_v57 }
 0x5dd   : >> { %3804 = vtanh.f32 %v1843_v62  ;;  %v1765_v5 = vpop.f32.mrb[34].mxu0 }
 0x5de   : >> { %3806 = vtanh.f32 %v1762_v63  ;;  %v1848_v6 = vpop.f32.mrb[34].mxu1  ;;  %v1767_v4 = vpop.f32.mrb[35].mxu0  ;;  %v1766_v10 = vadd.f32 %v1765_v5, %v1664_v3 }
 0x5df   : >> { %3808 = vtanh.f32 %v1845_v2  ;;  %v1768_v7 = vadd.f32 %v1767_v4, %v1664_v3  ;;  %v1850_v8 = vpop.f32.mrb[35].mxu1  ;;  %v1849_v12 = vadd.f32 %v1848_v6, %v1664_v3 }
 0x5e0   : >> { %v1851_v9 = vadd.f32 %v1850_v8, %v1664_v3 }
 0x5e1   : >> { %3810 = vtanh.f32 %v1768_v7 }
 0x5e2   : >> { %v3795_v11 = vpop.eup %3794  ;;  %3812 = vtanh.f32 %v1851_v9  ;;  %v3346_v9 = vld [vmem:[%s4633_s3 + $0x90] sm:$0xff] }
 0x5e3   : >> { %v3797_v13 = vpop.eup %3796  ;;  %3814 = vtanh.f32 %v1766_v10 }
 0x5e4   : >> { %v3799_v14 = vpop.eup %3798  ;;  %3816 = vtanh.f32 %v1849_v12  ;;  %v3347_v12 = vld [vmem:[%s4633_s3 + $0x98] sm:$0xff] }
 0x5e5   : >> { %v3801_v15 = vpop.eup %3800 }
 0x5e6   : >> { %v3803_v16 = vpop.eup %3802 }
 0x5e7   : >> { %v3805_v17 = vpop.eup %3804  ;;  %v3616_v18 = vpack.c.bf16 %v3803_v16, %v3795_v11 }
 0x5e8   : >> { %v3807_v19 = vpop.eup %3806  ;;  %v3620_v20 = vpack.c.bf16 %v3805_v17, %v3797_v13  ;;  %v3348_v13 = vld [vmem:[%s4633_s3 + $0xa0] sm:$0xf] }
 0x5e9   : >> { %v3809_v21 = vpop.eup %3808  ;;  %v3614_v22 = vpack.c.bf16 %v3807_v19, %v3799_v14  ;;  %v2098_v14 = vpop.permute.xlu1 %2097 }
 0x5ea   : >> { %v3618_v23 = vpack.c.bf16 %v3809_v21, %v3801_v15 }
 0x5eb   : >> { %3615 = vmatprep.subr.bf16.mxu0 %v3614_v22  ;;  %v3811_v24 = vpop.eup %3810 }
 0x5ec   : >> { %3619 = vmatprep.subr.bf16.mxu1 %v3618_v23  ;;  %3617 = vmatpush1.bf16.msra.mxu0 %v3616_v18  ;;  %v3813_v25 = vpop.eup %3812  ;;  %v2103_v23 = vpop.permute.xlu0 %2102 }
 0x5ed   : >> { %3621 = vmatpush1.bf16.msra.mxu1 %v3620_v20  ;;  %3336 = vmatprep.subr.msk.mxu0 %vm786_vm2, %v3811_v24  ;;  %v3815_v27 = vpop.eup %3814 }
 0x5ee   : >> { %3341 = vmatprep.subr.msk.mxu1 %vm786_vm2, %v3813_v25  ;;  %v3817_v28 = vpop.eup %3816 }
 0x5f0   : >> { %3337 = vmatpush1.msk.msra.mxu0 %vm786_vm2, %v3815_v27 }
 0x5f1   : >> { %3342 = vmatpush1.msk.msra.mxu1 %vm786_vm2, %v3817_v28  ;;  %3338 = vmatmul.mubr.msk.f32.vlgmr.msra.gmra.mrb[36].mxu0 %vm776_vm3, %v3330_v26 }
 0x5f2   : >> { %3343 = vmatmul.mubr.msk.f32.vlgmr.msra.gmra.mrb[36].mxu1 %vm776_vm3, %v3330_v26  ;;  %1979 = vmatprep.mubr.f32.mxu0 %v3931_v0 }
 0x5f3   : >> { %2062 = vmatprep.mubr.f32.mxu1 %v3931_v0 }
 0x5f5   : >> { %3339 = vmatmul.mubr.msk.f32.gmra.mrb[38].mxu0 %vm776_vm3, %v3331_v29 }
 0x5f6   : >> { %3344 = vmatmul.mubr.msk.f32.gmra.mrb[38].mxu1 %vm776_vm3, %v3331_v29  ;;  %1985 = vmatprep.mubr.f32.mxu0 %v3931_v0 }
 0x5f7   : >> { %2068 = vmatprep.mubr.f32.mxu1 %v3931_v0 }
 0x5f9   : >> { %3340 = vmatmul.mubr.msk.f32.gmra.mrb[40].mxu0 %vm776_vm3, %v3332_v30 }
 0x5fa   : >> { %3345 = vmatmul.mubr.msk.f32.gmra.mrb[40].mxu1 %vm776_vm3, %v3332_v30  ;;  %2195 = vmatprep.mubr.f32.mxu0 %v3931_v0 }
 0x5fb   : >> { %2278 = vmatprep.mubr.f32.mxu1 %v3931_v0 }
 0x6c4   : >> { %v1975_v32 = vpop.f32.mrb[36].mxu0 }
 0x6c5   : >> { %v1976_v33 = vadd.f32 %v1975_v32, %v1876_v31  ;;  %v2058_v34 = vpop.f32.mrb[36].mxu1  ;;  %v1977_v35 = vpop.f32.mrb[37].mxu0 }
 0x6c6   : >> { %v2059_v36 = vadd.f32 %v2058_v34, %v1876_v31  ;;  %v1978_v37 = vadd.f32 %v1977_v35, %v1876_v31  ;;  %v2060_v38 = vpop.f32.mrb[37].mxu1  ;;  %v2108_v32 = vpop.permute.xlu1 %2107 }
 0x6c7   : >> { %3818 = vtanh.f32 %v1976_v33  ;;  %v2061_v39 = vadd.f32 %v2060_v38, %v1876_v31 }
 0x6c8   : >> { %3820 = vtanh.f32 %v2059_v36  ;;  %v1981_v41 = vpop.f32.mrb[38].mxu0 }
 0x6c9   : >> { %3822 = vtanh.f32 %v1978_v37  ;;  %v1982_v42 = vadd.f32 %v1981_v41, %v1881_v40  ;;  %v2064_v43 = vpop.f32.mrb[38].mxu1  ;;  %v1983_v44 = vpop.f32.mrb[39].mxu0 }
 0x6ca   : >> { %3824 = vtanh.f32 %v2061_v39  ;;  %v2065_v45 = vadd.f32 %v2064_v43, %v1881_v40  ;;  %v1984_v46 = vadd.f32 %v1983_v44, %v1881_v40  ;;  %v2066_v47 = vpop.f32.mrb[39].mxu1 }
 0x6cb   : >> { %3826 = vtanh.f32 %v1982_v42  ;;  %v2067_v48 = vadd.f32 %v2066_v47, %v1881_v40 }
 0x6cc   : >> { %3828 = vtanh.f32 %v2065_v45  ;;  %v1987_v50 = vpop.f32.mrb[40].mxu0 }
 0x6cd   : >> { %3830 = vtanh.f32 %v1984_v46  ;;  %v2070_v51 = vpop.f32.mrb[40].mxu1  ;;  %v1989_v52 = vpop.f32.mrb[41].mxu0  ;;  %v1988_v56 = vadd.f32 %v1987_v50, %v1886_v49 }
 0x6ce   : >> { %3832 = vtanh.f32 %v2067_v48  ;;  %v1990_v53 = vadd.f32 %v1989_v52, %v1886_v49  ;;  %v2072_v54 = vpop.f32.mrb[41].mxu1  ;;  %v2071_v58 = vadd.f32 %v2070_v51, %v1886_v49 }
 0x6cf   : >> { %v2073_v55 = vadd.f32 %v2072_v54, %v1886_v49 }
 0x6d0   : >> { %3834 = vtanh.f32 %v1990_v53 }
 0x6d1   : >> { %v3819_v57 = vpop.eup %3818  ;;  %3836 = vtanh.f32 %v2073_v55  ;;  %v3362_v55 = vld [vmem:[%s4633_s3 + $0xa8] sm:$0xff] }
 0x6d2   : >> { %v3821_v59 = vpop.eup %3820  ;;  %3838 = vtanh.f32 %v1988_v56 }
 0x6d3   : >> { %v3823_v60 = vpop.eup %3822  ;;  %3840 = vtanh.f32 %v2071_v58  ;;  %v3363_v58 = vld [vmem:[%s4633_s3 + $0xb0] sm:$0xff] }
 0x6d4   : >> { %v3825_v61 = vpop.eup %3824 }
 0x6d5   : >> { %v3827_v62 = vpop.eup %3826 }
 0x6d6   : >> { %v3829_v63 = vpop.eup %3828  ;;  %v3624_v1 = vpack.c.bf16 %v3827_v62, %v3819_v57 }
 0x6d7   : >> { %v3831_v2 = vpop.eup %3830  ;;  %v3628_v3 = vpack.c.bf16 %v3829_v63, %v3821_v59  ;;  %v3364_v59 = vld [vmem:[%s4633_s3 + $0xb8] sm:$0xf] }
 0x6d8   : >> { %v3833_v5 = vpop.eup %3832  ;;  %v3622_v6 = vpack.c.bf16 %v3831_v2, %v3823_v60  ;;  %v2320_v60 = vpop.permute.xlu0 %2319 }
 0x6d9   : >> { %v3626_v4 = vpack.c.bf16 %v3833_v5, %v3825_v61 }
 0x6da   : >> { %3623 = vmatprep.subr.bf16.mxu0 %v3622_v6  ;;  %v3835_v7 = vpop.eup %3834 }
 0x6db   : >> { %3627 = vmatprep.subr.bf16.mxu1 %v3626_v4  ;;  %3625 = vmatpush1.bf16.msra.mxu0 %v3624_v1  ;;  %v3837_v8 = vpop.eup %3836  ;;  %v2325_v4 = vpop.permute.xlu1 %2324 }
 0x6dc   : >> { %3629 = vmatpush1.bf16.msra.mxu1 %v3628_v3  ;;  %3352 = vmatprep.subr.msk.mxu0 %vm786_vm2, %v3835_v7  ;;  %v3839_v10 = vpop.eup %3838 }
 0x6dd   : >> { %3357 = vmatprep.subr.msk.mxu1 %vm786_vm2, %v3837_v8  ;;  %v3841_v11 = vpop.eup %3840 }
 0x6df   : >> { %3353 = vmatpush1.msk.msra.mxu0 %vm786_vm2, %v3839_v10 }
 0x6e0   : >> { %3358 = vmatpush1.msk.msra.mxu1 %vm786_vm2, %v3841_v11  ;;  %3354 = vmatmul.mubr.msk.f32.vlgmr.msra.gmra.mrb[42].mxu0 %vm776_vm3, %v3346_v9 }
 0x6e1   : >> { %3359 = vmatmul.mubr.msk.f32.vlgmr.msra.gmra.mrb[42].mxu1 %vm776_vm3, %v3346_v9  ;;  %2201 = vmatprep.mubr.f32.mxu0 %v3931_v0 }
 0x6e2   : >> { %2284 = vmatprep.mubr.f32.mxu1 %v3931_v0 }
 0x6e4   : >> { %3355 = vmatmul.mubr.msk.f32.gmra.mrb[44].mxu0 %vm776_vm3, %v3347_v12 }
 0x6e5   : >> { %3360 = vmatmul.mubr.msk.f32.gmra.mrb[44].mxu1 %vm776_vm3, %v3347_v12  ;;  %2207 = vmatprep.mubr.f32.mxu0 %v3931_v0 }
 0x6e6   : >> { %2290 = vmatprep.mubr.f32.mxu1 %v3931_v0 }
 0x6e8   : >> { %3356 = vmatmul.mubr.msk.f32.gmra.mrb[46].mxu0 %vm776_vm3, %v3348_v13 }
 0x6e9   : >> { %3361 = vmatmul.mubr.msk.f32.gmra.mrb[46].mxu1 %vm776_vm3, %v3348_v13  ;;  %2417 = vmatprep.mubr.f32.mxu0 %v3931_v0 }
 0x6ea   : >> { %2500 = vmatprep.mubr.f32.mxu1 %v3931_v0 }
 0x7b3   : >> { %v2197_v15 = vpop.f32.mrb[42].mxu0 }
 0x7b4   : >> { %v2198_v16 = vadd.f32 %v2197_v15, %v2098_v14  ;;  %v2280_v17 = vpop.f32.mrb[42].mxu1  ;;  %v2199_v18 = vpop.f32.mrb[43].mxu0 }
 0x7b5   : >> { %v2281_v19 = vadd.f32 %v2280_v17, %v2098_v14  ;;  %v2200_v20 = vadd.f32 %v2199_v18, %v2098_v14  ;;  %v2282_v21 = vpop.f32.mrb[43].mxu1  ;;  %v2330_v15 = vpop.permute.xlu0 %2329 }
 0x7b6   : >> { %3842 = vtanh.f32 %v2198_v16  ;;  %v2283_v22 = vadd.f32 %v2282_v21, %v2098_v14 }
 0x7b7   : >> { %3844 = vtanh.f32 %v2281_v19  ;;  %v2203_v24 = vpop.f32.mrb[44].mxu0 }
 0x7b8   : >> { %3846 = vtanh.f32 %v2200_v20  ;;  %v2204_v25 = vadd.f32 %v2203_v24, %v2103_v23  ;;  %v2286_v26 = vpop.f32.mrb[44].mxu1  ;;  %v2205_v27 = vpop.f32.mrb[45].mxu0 }
 0x7b9   : >> { %3848 = vtanh.f32 %v2283_v22  ;;  %v2287_v28 = vadd.f32 %v2286_v26, %v2103_v23  ;;  %v2206_v29 = vadd.f32 %v2205_v27, %v2103_v23  ;;  %v2288_v30 = vpop.f32.mrb[45].mxu1 }
 0x7ba   : >> { %3850 = vtanh.f32 %v2204_v25  ;;  %v2289_v31 = vadd.f32 %v2288_v30, %v2103_v23 }
 0x7bb   : >> { %3852 = vtanh.f32 %v2287_v28  ;;  %v2209_v33 = vpop.f32.mrb[46].mxu0 }
 0x7bc   : >> { %3854 = vtanh.f32 %v2206_v29  ;;  %v2292_v34 = vpop.f32.mrb[46].mxu1  ;;  %v2211_v35 = vpop.f32.mrb[47].mxu0  ;;  %v2210_v39 = vadd.f32 %v2209_v33, %v2108_v32 }
 0x7bd   : >> { %3856 = vtanh.f32 %v2289_v31  ;;  %v2212_v36 = vadd.f32 %v2211_v35, %v2108_v32  ;;  %v2294_v37 = vpop.f32.mrb[47].mxu1  ;;  %v2293_v41 = vadd.f32 %v2292_v34, %v2108_v32 }
 0x7be   : >> { %v2295_v38 = vadd.f32 %v2294_v37, %v2108_v32 }
 0x7bf   : >> { %3858 = vtanh.f32 %v2212_v36 }
 0x7c0   : >> { %v3843_v40 = vpop.eup %3842  ;;  %3860 = vtanh.f32 %v2295_v38  ;;  %v3378_v38 = vld [vmem:[%s4633_s3 + $0xc0] sm:$0xff] }
 0x7c1   : >> { %v3845_v42 = vpop.eup %3844  ;;  %3862 = vtanh.f32 %v2210_v39 }
 0x7c2   : >> { %v3847_v43 = vpop.eup %3846  ;;  %3864 = vtanh.f32 %v2293_v41  ;;  %v3379_v41 = vld [vmem:[%s4633_s3 + $0xc8] sm:$0xff] }
 0x7c3   : >> { %v3849_v44 = vpop.eup %3848 }
 0x7c4   : >> { %v3851_v45 = vpop.eup %3850 }
 0x7c5   : >> { %v3853_v46 = vpop.eup %3852  ;;  %v3632_v47 = vpack.c.bf16 %v3851_v45, %v3843_v40 }
 0x7c6   : >> { %v3855_v48 = vpop.eup %3854  ;;  %v3636_v49 = vpack.c.bf16 %v3853_v46, %v3845_v42  ;;  %v3380_v42 = vld [vmem:[%s4633_s3 + $0xd0] sm:$0xf] }
 0x7c7   : >> { %v3857_v50 = vpop.eup %3856  ;;  %v3630_v51 = vpack.c.bf16 %v3855_v48, %v3847_v43  ;;  %v2542_v43 = vpop.permute.xlu1 %2541 }
 0x7c8   : >> { %v3634_v52 = vpack.c.bf16 %v3857_v50, %v3849_v44 }
 0x7c9   : >> { %3631 = vmatprep.subr.bf16.mxu0 %v3630_v51  ;;  %v3859_v53 = vpop.eup %3858 }
 0x7ca   : >> { %3635 = vmatprep.subr.bf16.mxu1 %v3634_v52  ;;  %3633 = vmatpush1.bf16.msra.mxu0 %v3632_v47  ;;  %v3861_v54 = vpop.eup %3860  ;;  %v2547_v52 = vpop.permute.xlu0 %2546 }
 0x7cb   : >> { %3637 = vmatpush1.bf16.msra.mxu1 %v3636_v49  ;;  %3368 = vmatprep.subr.msk.mxu0 %vm786_vm2, %v3859_v53  ;;  %v3863_v56 = vpop.eup %3862 }
 0x7cc   : >> { %3373 = vmatprep.subr.msk.mxu1 %vm786_vm2, %v3861_v54  ;;  %v3865_v57 = vpop.eup %3864 }
 0x7ce   : >> { %3369 = vmatpush1.msk.msra.mxu0 %vm786_vm2, %v3863_v56 }
 0x7cf   : >> { %3374 = vmatpush1.msk.msra.mxu1 %vm786_vm2, %v3865_v57  ;;  %3370 = vmatmul.mubr.msk.f32.vlgmr.msra.gmra.mrb[48].mxu0 %vm776_vm3, %v3362_v55 }
 0x7d0   : >> { %3375 = vmatmul.mubr.msk.f32.vlgmr.msra.gmra.mrb[48].mxu1 %vm776_vm3, %v3362_v55  ;;  %2423 = vmatprep.mubr.f32.mxu0 %v3931_v0 }
 0x7d1   : >> { %2506 = vmatprep.mubr.f32.mxu1 %v3931_v0 }
 0x7d3   : >> { %3371 = vmatmul.mubr.msk.f32.gmra.mrb[50].mxu0 %vm776_vm3, %v3363_v58 }
 0x7d4   : >> { %3376 = vmatmul.mubr.msk.f32.gmra.mrb[50].mxu1 %vm776_vm3, %v3363_v58  ;;  %2429 = vmatprep.mubr.f32.mxu0 %v3931_v0 }
 0x7d5   : >> { %2512 = vmatprep.mubr.f32.mxu1 %v3931_v0 }
 0x7d7   : >> { %3372 = vmatmul.mubr.msk.f32.gmra.mrb[52].mxu0 %vm776_vm3, %v3364_v59 }
 0x7d8   : >> { %3377 = vmatmul.mubr.msk.f32.gmra.mrb[52].mxu1 %vm776_vm3, %v3364_v59  ;;  %2639 = vmatprep.mubr.f32.mxu0 %v3931_v0 }
 0x7d9   : >> { %2722 = vmatprep.mubr.f32.mxu1 %v3931_v0 }
 0x8a2   : >> { %v2419_v61 = vpop.f32.mrb[48].mxu0 }
 0x8a3   : >> { %v2420_v62 = vadd.f32 %v2419_v61, %v2320_v60  ;;  %v2502_v63 = vpop.f32.mrb[48].mxu1  ;;  %v2421_v1 = vpop.f32.mrb[49].mxu0 }
 0x8a4   : >> { %v2503_v2 = vadd.f32 %v2502_v63, %v2320_v60  ;;  %v2422_v3 = vadd.f32 %v2421_v1, %v2320_v60  ;;  %v2504_v5 = vpop.f32.mrb[49].mxu1 }
 0x8a5   : >> { %3866 = vtanh.f32 %v2420_v62  ;;  %v2505_v6 = vadd.f32 %v2504_v5, %v2320_v60  ;;  %v2552_v60 = vpop.permute.xlu1 %2551 }
 0x8a6   : >> { %3868 = vtanh.f32 %v2503_v2  ;;  %v2425_v7 = vpop.f32.mrb[50].mxu0 }
 0x8a7   : >> { %3870 = vtanh.f32 %v2422_v3  ;;  %v2426_v8 = vadd.f32 %v2425_v7, %v2325_v4  ;;  %v2508_v9 = vpop.f32.mrb[50].mxu1  ;;  %v2427_v10 = vpop.f32.mrb[51].mxu0 }
 0x8a8   : >> { %3872 = vtanh.f32 %v2505_v6  ;;  %v2509_v11 = vadd.f32 %v2508_v9, %v2325_v4  ;;  %v2428_v12 = vadd.f32 %v2427_v10, %v2325_v4  ;;  %v2510_v13 = vpop.f32.mrb[51].mxu1 }
 0x8a9   : >> { %3874 = vtanh.f32 %v2426_v8  ;;  %v2511_v14 = vadd.f32 %v2510_v13, %v2325_v4 }
 0x8aa   : >> { %3876 = vtanh.f32 %v2509_v11  ;;  %v2431_v16 = vpop.f32.mrb[52].mxu0 }
 0x8ab   : >> { %3878 = vtanh.f32 %v2428_v12  ;;  %v2514_v17 = vpop.f32.mrb[52].mxu1  ;;  %v2433_v18 = vpop.f32.mrb[53].mxu0  ;;  %v2432_v22 = vadd.f32 %v2431_v16, %v2330_v15 }
 0x8ac   : >> { %3880 = vtanh.f32 %v2511_v14  ;;  %v2434_v19 = vadd.f32 %v2433_v18, %v2330_v15  ;;  %v2516_v20 = vpop.f32.mrb[53].mxu1  ;;  %v2515_v24 = vadd.f32 %v2514_v17, %v2330_v15 }
 0x8ad   : >> { %v2517_v21 = vadd.f32 %v2516_v20, %v2330_v15  ;;  %v2753_v20 = vld [vmem:[%s4635_s5] sm:$0x3] }
 0x8ae   : >> { %3882 = vtanh.f32 %v2434_v19 }
 0x8af   : >> { %v3867_v23 = vpop.eup %3866  ;;  %3884 = vtanh.f32 %v2517_v21 }
 0x8b0   : >> { %v3869_v25 = vpop.eup %3868  ;;  %3886 = vtanh.f32 %v2432_v22 }
 0x8b1   : >> { %v3871_v26 = vpop.eup %3870  ;;  %3888 = vtanh.f32 %v2515_v24 }
 0x8b2   : >> { %v3873_v27 = vpop.eup %3872 }
 0x8b3   : >> { %v3875_v28 = vpop.eup %3874 }
 0x8b4   : >> { %v3877_v29 = vpop.eup %3876  ;;  %v3640_v30 = vpack.c.bf16 %v3875_v28, %v3867_v23  ;;  %v2758_v23 = vpop.permute.xlu0 %2757 }
 0x8b5   : >> { %v3879_v31 = vpop.eup %3878  ;;  %v3644_v32 = vpack.c.bf16 %v3877_v29, %v3869_v25 }
 0x8b6   : >> { %v3881_v33 = vpop.eup %3880  ;;  %v3638_v34 = vpack.c.bf16 %v3879_v31, %v3871_v26 }
 0x8b7   : >> { %v3642_v35 = vpack.c.bf16 %v3881_v33, %v3873_v27 }
 0x8b8   : >> { %3639 = vmatprep.subr.bf16.mxu0 %v3638_v34  ;;  %v3883_v36 = vpop.eup %3882 }
 0x8b9   : >> { %3643 = vmatprep.subr.bf16.mxu1 %v3642_v35  ;;  %3641 = vmatpush1.bf16.msra.mxu0 %v3640_v30  ;;  %v3885_v37 = vpop.eup %3884 }
 0x8ba   : >> { %3645 = vmatpush1.bf16.msra.mxu1 %v3644_v32  ;;  %3384 = vmatprep.subr.msk.mxu0 %vm786_vm2, %v3883_v36  ;;  %v3887_v39 = vpop.eup %3886 }
 0x8bb   : >> { %3389 = vmatprep.subr.msk.mxu1 %vm786_vm2, %v3885_v37  ;;  %v3889_v40 = vpop.eup %3888 }
 0x8bd   : >> { %3385 = vmatpush1.msk.msra.mxu0 %vm786_vm2, %v3887_v39 }
 0x8be   : >> { %3390 = vmatpush1.msk.msra.mxu1 %vm786_vm2, %v3889_v40  ;;  %3386 = vmatmul.mubr.msk.f32.vlgmr.msra.gmra.mrb[54].mxu0 %vm776_vm3, %v3378_v38 }
 0x8bf   : >> { %3391 = vmatmul.mubr.msk.f32.vlgmr.msra.gmra.mrb[54].mxu1 %vm776_vm3, %v3378_v38  ;;  %2645 = vmatprep.mubr.f32.mxu0 %v3931_v0 }
 0x8c0   : >> { %2728 = vmatprep.mubr.f32.mxu1 %v3931_v0 }
 0x8c2   : >> { %3387 = vmatmul.mubr.msk.f32.gmra.mrb[56].mxu0 %vm776_vm3, %v3379_v41 }
 0x8c3   : >> { %3392 = vmatmul.mubr.msk.f32.gmra.mrb[56].mxu1 %vm776_vm3, %v3379_v41  ;;  %2651 = vmatprep.mubr.f32.mxu0 %v3931_v0 }
 0x8c4   : >> { %2734 = vmatprep.mubr.f32.mxu1 %v3931_v0 }
 0x8c6   : >> { %3388 = vmatmul.mubr.msk.f32.gmra.mrb[58].mxu0 %vm776_vm3, %v3380_v42 }
 0x8c7   : >> { %3393 = vmatmul.mubr.msk.f32.gmra.mrb[58].mxu1 %vm776_vm3, %v3380_v42  ;;  %2839 = vmatprep.mubr.f32.mxu0 %v3931_v0 }
 0x8c8   : >> { %2910 = vmatprep.mubr.f32.mxu1 %v3931_v0 }
 0x991   : >> { %v2641_v44 = vpop.f32.mrb[54].mxu0 }
 0x992   : >> { %v2642_v45 = vadd.f32 %v2641_v44, %v2542_v43  ;;  %v2724_v46 = vpop.f32.mrb[54].mxu1  ;;  %v2643_v47 = vpop.f32.mrb[55].mxu0 }
 0x993   : >> { %v2725_v48 = vadd.f32 %v2724_v46, %v2542_v43  ;;  %v2644_v49 = vadd.f32 %v2643_v47, %v2542_v43  ;;  %v2726_v50 = vpop.f32.mrb[55].mxu1 }
 0x994   : >> { %3890 = vtanh.f32 %v2642_v45  ;;  %v2727_v51 = vadd.f32 %v2726_v50, %v2542_v43 }
 0x995   : >> { %3892 = vtanh.f32 %v2725_v48  ;;  %v2647_v53 = vpop.f32.mrb[56].mxu0 }
 0x996   : >> { %3894 = vtanh.f32 %v2644_v49  ;;  %v2648_v54 = vadd.f32 %v2647_v53, %v2547_v52  ;;  %v2730_v55 = vpop.f32.mrb[56].mxu1  ;;  %v2649_v56 = vpop.f32.mrb[57].mxu0 }
 0x997   : >> { %3896 = vtanh.f32 %v2727_v51  ;;  %v2731_v57 = vadd.f32 %v2730_v55, %v2547_v52  ;;  %v2650_v0 = vadd.f32 %v2649_v56, %v2547_v52  ;;  %v2732_v58 = vpop.f32.mrb[57].mxu1 }
 0x998   : >> { %3898 = vtanh.f32 %v2648_v54  ;;  %v2733_v59 = vadd.f32 %v2732_v58, %v2547_v52 }
 0x999   : >> { %3900 = vtanh.f32 %v2731_v57  ;;  %v2653_v61 = vpop.f32.mrb[58].mxu0 }
 0x99a   : >> { %3902 = vtanh.f32 %v2650_v0  ;;  %v2736_v62 = vpop.f32.mrb[58].mxu1  ;;  %v2655_v63 = vpop.f32.mrb[59].mxu0  ;;  %v2654_v5 = vadd.f32 %v2653_v61, %v2552_v60 }
 0x99b   : >> { %3904 = vtanh.f32 %v2733_v59  ;;  %v2656_v1 = vadd.f32 %v2655_v63, %v2552_v60  ;;  %v2738_v2 = vpop.f32.mrb[59].mxu1  ;;  %v2737_v4 = vadd.f32 %v2736_v62, %v2552_v60 }
 0x99c   : >> { %v2739_v3 = vadd.f32 %v2738_v2, %v2552_v60 }
 0x99d   : >> { %3906 = vtanh.f32 %v2656_v1 }
 0x99e   : >> { %v3891_v6 = vpop.eup %3890  ;;  %3908 = vtanh.f32 %v2739_v3 }
 0x99f   : >> { %v3893_v7 = vpop.eup %3892  ;;  %3910 = vtanh.f32 %v2654_v5 }
 0x9a0   : >> { %v3895_v8 = vpop.eup %3894  ;;  %3912 = vtanh.f32 %v2737_v4 }
 0x9a1   : >> { %v3897_v9 = vpop.eup %3896 }
 0x9a2   : >> { %v3899_v10 = vpop.eup %3898 }
 0x9a3   : >> { %v3901_v11 = vpop.eup %3900  ;;  %v3648_v12 = vpack.c.bf16 %v3899_v10, %v3891_v6 }
 0x9a4   : >> { %v3903_v13 = vpop.eup %3902  ;;  %v3652_v14 = vpack.c.bf16 %v3901_v11, %v3893_v7 }
 0x9a5   : >> { %v3905_v15 = vpop.eup %3904  ;;  %v3646_v16 = vpack.c.bf16 %v3903_v13, %v3895_v8 }
 0x9a6   : >> { %v3650_v17 = vpack.c.bf16 %v3905_v15, %v3897_v9 }
 0x9a7   : >> { %3647 = vmatprep.subr.bf16.mxu0 %v3646_v16  ;;  %v3907_v18 = vpop.eup %3906 }
 0x9a8   : >> { %3651 = vmatprep.subr.bf16.mxu1 %v3650_v17  ;;  %3649 = vmatpush1.bf16.msra.mxu0 %v3648_v12  ;;  %v3909_v19 = vpop.eup %3908 }
 0x9a9   : >> { %3653 = vmatpush1.bf16.msra.mxu1 %v3652_v14  ;;  %3394 = vmatprep.subr.msk.mxu0 %vm786_vm2, %v3907_v18  ;;  %v3911_v21 = vpop.eup %3910 }
 0x9aa   : >> { %3397 = vmatprep.subr.msk.mxu1 %vm786_vm2, %v3909_v19  ;;  %v3913_v22 = vpop.eup %3912 }
 0x9ac   : >> { %3395 = vmatpush1.msk.msra.mxu0 %vm786_vm2, %v3911_v21 }
 0x9ad   : >> { %3398 = vmatpush1.msk.msra.mxu1 %vm786_vm2, %v3913_v22  ;;  %3396 = vmatmul.mubr.msk.f32.vlgmr.msra.gmra.mrb[60].mxu0 %vm776_vm3, %v2753_v20 }
 0x9ae   : >> { %3399 = vmatmul.mubr.msk.f32.vlgmr.msra.gmra.mrb[60].mxu1 %vm776_vm3, %v2753_v20 }
 0xa80   : >> { %v2841_v24 = vpop.f32.mrb[60].mxu0 }
 0xa81   : >> { %v2842_v25 = vadd.f32 %v2841_v24, %v2758_v23  ;;  %v2912_v26 = vpop.f32.mrb[60].mxu1  ;;  %v2843_v27 = vpop.f32.mrb[61].mxu0 }
 0xa82   : >> { %v2844_v28 = vadd.f32 %v2843_v27, %v2758_v23  ;;  %v2914_v29 = vpop.f32.mrb[61].mxu1  ;;  %v2913_v31 = vadd.f32 %v2912_v26, %v2758_v23 }
 0xa83   : >> { %2917 = vxpose.xlu1.b32.start.end [1/1] (short) %v2842_v25, 128  ;;  %v2915_v30 = vadd.f32 %v2914_v29, %v2758_v23 }
 0xa84   : >> { %2949 = vxpose.xlu0.b32.start.end [1/1] (short) %v2844_v28, 128 }
 0xac0   : >> { %3013 = vxpose.xlu1.b32.start.end [1/1] (short) %v2915_v30, 128 }
 0xac1   : >> { %2981 = vxpose.xlu0.b32.start.end [1/1] (short) %v2913_v31, 128 }
 0xb03   : >> { %v2933_v32 = vpop.trf.xlu1 }
 0xb04   : >> { %v2965_v33 = vpop.trf.xlu0  ;;  %3047 = vst.msk [vmem:[%s4494_s13] sm:$0xff] %vm3046_vm4, %v2933_v32 }
 0xb05   : >> { %3063 = vst.msk [vmem:[%s4494_s13 + $0x80] sm:$0xff] %vm3046_vm4, %v2965_v33 }
 0xb07   : >> { %v2934_v34 = vpop.trf.xlu1 }
 0xb08   : >> { %v2966_v35 = vpop.trf.xlu0  ;;  %3048 = vst.msk [vmem:[%s4494_s13 + $0x8] sm:$0xff] %vm3046_vm4, %v2934_v34 }
 0xb09   : >> { %3064 = vst.msk [vmem:[%s4494_s13 + $0x88] sm:$0xff] %vm3046_vm4, %v2966_v35 }
 0xb0b   : >> { %v2935_v36 = vpop.trf.xlu1 }
 0xb0c   : >> { %v2967_v37 = vpop.trf.xlu0  ;;  %3049 = vst.msk [vmem:[%s4494_s13 + $0x10] sm:$0xff] %vm3046_vm4, %v2935_v36 }
 0xb0d   : >> { %3065 = vst.msk [vmem:[%s4494_s13 + $0x90] sm:$0xff] %vm3046_vm4, %v2967_v37 }
 0xb0f   : >> { %v2936_v38 = vpop.trf.xlu1 }
 0xb10   : >> { %v2968_v39 = vpop.trf.xlu0  ;;  %3050 = vst.msk [vmem:[%s4494_s13 + $0x18] sm:$0xff] %vm3046_vm4, %v2936_v38 }
 0xb11   : >> { %3066 = vst.msk [vmem:[%s4494_s13 + $0x98] sm:$0xff] %vm3046_vm4, %v2968_v39 }
 0xb13   : >> { %v2937_v40 = vpop.trf.xlu1 }
 0xb14   : >> { %v2969_v41 = vpop.trf.xlu0  ;;  %3051 = vst.msk [vmem:[%s4494_s13 + $0x20] sm:$0xff] %vm3046_vm4, %v2937_v40 }
 0xb15   : >> { %3067 = vst.msk [vmem:[%s4494_s13 + $0xa0] sm:$0xff] %vm3046_vm4, %v2969_v41 }
 0xb17   : >> { %v2938_v42 = vpop.trf.xlu1 }
 0xb18   : >> { %v2970_v43 = vpop.trf.xlu0  ;;  %3052 = vst.msk [vmem:[%s4494_s13 + $0x28] sm:$0xff] %vm3046_vm4, %v2938_v42 }
 0xb19   : >> { %3068 = vst.msk [vmem:[%s4494_s13 + $0xa8] sm:$0xff] %vm3046_vm4, %v2970_v43 }
 0xb1b   : >> { %v2939_v44 = vpop.trf.xlu1 }
 0xb1c   : >> { %v2971_v45 = vpop.trf.xlu0  ;;  %3053 = vst.msk [vmem:[%s4494_s13 + $0x30] sm:$0xff] %vm3046_vm4, %v2939_v44 }
 0xb1d   : >> { %3069 = vst.msk [vmem:[%s4494_s13 + $0xb0] sm:$0xff] %vm3046_vm4, %v2971_v45 }
 0xb1f   : >> { %v2940_v46 = vpop.trf.xlu1 }
 0xb20   : >> { %v2972_v47 = vpop.trf.xlu0  ;;  %3054 = vst.msk [vmem:[%s4494_s13 + $0x38] sm:$0xff] %vm3046_vm4, %v2940_v46 }
 0xb21   : >> { %3070 = vst.msk [vmem:[%s4494_s13 + $0xb8] sm:$0xff] %vm3046_vm4, %v2972_v47 }
 0xb23   : >> { %v2941_v48 = vpop.trf.xlu1 }
 0xb24   : >> { %v2973_v49 = vpop.trf.xlu0  ;;  %3055 = vst.msk [vmem:[%s4494_s13 + $0x40] sm:$0xff] %vm3046_vm4, %v2941_v48 }
 0xb25   : >> { %3071 = vst.msk [vmem:[%s4494_s13 + $0xc0] sm:$0xff] %vm3046_vm4, %v2973_v49 }
 0xb27   : >> { %v2942_v50 = vpop.trf.xlu1 }
 0xb28   : >> { %v2974_v51 = vpop.trf.xlu0  ;;  %3056 = vst.msk [vmem:[%s4494_s13 + $0x48] sm:$0xff] %vm3046_vm4, %v2942_v50 }
 0xb29   : >> { %3072 = vst.msk [vmem:[%s4494_s13 + $0xc8] sm:$0xff] %vm3046_vm4, %v2974_v51 }
 0xb2b   : >> { %v2943_v52 = vpop.trf.xlu1 }
 0xb2c   : >> { %v2975_v53 = vpop.trf.xlu0  ;;  %3057 = vst.msk [vmem:[%s4494_s13 + $0x50] sm:$0xff] %vm3046_vm4, %v2943_v52 }
 0xb2d   : >> { %3073 = vst.msk [vmem:[%s4494_s13 + $0xd0] sm:$0xff] %vm3046_vm4, %v2975_v53 }
 0xb2f   : >> { %v2944_v54 = vpop.trf.xlu1 }
 0xb30   : >> { %v2976_v55 = vpop.trf.xlu0  ;;  %3058 = vst.msk [vmem:[%s4494_s13 + $0x58] sm:$0xff] %vm3046_vm4, %v2944_v54 }
 0xb31   : >> { %3074 = vst.msk [vmem:[%s4494_s13 + $0xd8] sm:$0xff] %vm3046_vm4, %v2976_v55 }
 0xb33   : >> { %v2945_v56 = vpop.trf.xlu1 }
 0xb34   : >> { %v2977_v57 = vpop.trf.xlu0  ;;  %3059 = vst.msk [vmem:[%s4494_s13 + $0x60] sm:$0xff] %vm3046_vm4, %v2945_v56 }
 0xb35   : >> { %3075 = vst.msk [vmem:[%s4494_s13 + $0xe0] sm:$0xff] %vm3046_vm4, %v2977_v57 }
 0xb37   : >> { %v2946_v0 = vpop.trf.xlu1 }
 0xb38   : >> { %v2978_v58 = vpop.trf.xlu0  ;;  %3060 = vst.msk [vmem:[%s4494_s13 + $0x68] sm:$0xff] %vm3046_vm4, %v2946_v0 }
 0xb39   : >> { %3076 = vst.msk [vmem:[%s4494_s13 + $0xe8] sm:$0xff] %vm3046_vm4, %v2978_v58 }
 0xb3b   : >> { %v2947_v59 = vpop.trf.xlu1 }
 0xb3c   : >> { %v2979_v60 = vpop.trf.xlu0  ;;  %3061 = vst.msk [vmem:[%s4494_s13 + $0x70] sm:$0xff] %vm3046_vm4, %v2947_v59 }
 0xb3d   : >> { %3077 = vst.msk [vmem:[%s4494_s13 + $0xf0] sm:$0xff] %vm3046_vm4, %v2979_v60 }
 0xb3f   : >> { %v2948_v61 = vpop.trf.xlu1 }
 0xb40   : >> { %v2980_v62 = vpop.trf.xlu0  ;;  %3062 = vst.msk [vmem:[%s4494_s13 + $0x78] sm:$0xff] %vm3046_vm4, %v2948_v61 }
 0xb41   : >> { %3078 = vst.msk [vmem:[%s4494_s13 + $0xf8] sm:$0xff] %vm3046_vm4, %v2980_v62 }
 0xb43   : >> { %v3029_v63 = vpop.trf.xlu1 }
 0xb44   : >> { %v2997_v1 = vpop.trf.xlu0  ;;  %3095 = vst.msk [vmem:[%s4494_s13 + $0x180] sm:$0xff] %vm3046_vm4, %v3029_v63 }
 0xb45   : >> { %3079 = vst.msk [vmem:[%s4494_s13 + $0x100] sm:$0xff] %vm3046_vm4, %v2997_v1 }
 0xb47   : >> { %v3030_v2 = vpop.trf.xlu1 }
 0xb48   : >> { %v2998_v3 = vpop.trf.xlu0  ;;  %3096 = vst.msk [vmem:[%s4494_s13 + $0x188] sm:$0xff] %vm3046_vm4, %v3030_v2 }
 0xb49   : >> { %3080 = vst.msk [vmem:[%s4494_s13 + $0x108] sm:$0xff] %vm3046_vm4, %v2998_v3 }
 0xb4b   : >> { %v3031_v5 = vpop.trf.xlu1 }
 0xb4c   : >> { %v2999_v6 = vpop.trf.xlu0  ;;  %3097 = vst.msk [vmem:[%s4494_s13 + $0x190] sm:$0xff] %vm3046_vm4, %v3031_v5 }
 0xb4d   : >> { %3081 = vst.msk [vmem:[%s4494_s13 + $0x110] sm:$0xff] %vm3046_vm4, %v2999_v6 }
 0xb4f   : >> { %v3032_v4 = vpop.trf.xlu1 }
 0xb50   : >> { %v3000_v7 = vpop.trf.xlu0  ;;  %3098 = vst.msk [vmem:[%s4494_s13 + $0x198] sm:$0xff] %vm3046_vm4, %v3032_v4 }
 0xb51   : >> { %3082 = vst.msk [vmem:[%s4494_s13 + $0x118] sm:$0xff] %vm3046_vm4, %v3000_v7 }
 0xb53   : >> { %v3033_v8 = vpop.trf.xlu1 }
 0xb54   : >> { %v3001_v9 = vpop.trf.xlu0  ;;  %3099 = vst.msk [vmem:[%s4494_s13 + $0x1a0] sm:$0xff] %vm3046_vm4, %v3033_v8 }
 0xb55   : >> { %3083 = vst.msk [vmem:[%s4494_s13 + $0x120] sm:$0xff] %vm3046_vm4, %v3001_v9 }
 0xb57   : >> { %v3034_v10 = vpop.trf.xlu1 }
 0xb58   : >> { %v3002_v11 = vpop.trf.xlu0  ;;  %3100 = vst.msk [vmem:[%s4494_s13 + $0x1a8] sm:$0xff] %vm3046_vm4, %v3034_v10 }
 0xb59   : >> { %3084 = vst.msk [vmem:[%s4494_s13 + $0x128] sm:$0xff] %vm3046_vm4, %v3002_v11 }
 0xb5b   : >> { %v3035_v12 = vpop.trf.xlu1 }
 0xb5c   : >> { %v3003_v13 = vpop.trf.xlu0  ;;  %3101 = vst.msk [vmem:[%s4494_s13 + $0x1b0] sm:$0xff] %vm3046_vm4, %v3035_v12 }
 0xb5d   : >> { %3085 = vst.msk [vmem:[%s4494_s13 + $0x130] sm:$0xff] %vm3046_vm4, %v3003_v13 }
 0xb5f   : >> { %v3036_v14 = vpop.trf.xlu1 }
 0xb60   : >> { %v3004_v15 = vpop.trf.xlu0  ;;  %3102 = vst.msk [vmem:[%s4494_s13 + $0x1b8] sm:$0xff] %vm3046_vm4, %v3036_v14 }
 0xb61   : >> { %3086 = vst.msk [vmem:[%s4494_s13 + $0x138] sm:$0xff] %vm3046_vm4, %v3004_v15 }
 0xb63   : >> { %v3037_v16 = vpop.trf.xlu1 }
 0xb64   : >> { %v3005_v17 = vpop.trf.xlu0  ;;  %3103 = vst.msk [vmem:[%s4494_s13 + $0x1c0] sm:$0xff] %vm3046_vm4, %v3037_v16 }
 0xb65   : >> { %3087 = vst.msk [vmem:[%s4494_s13 + $0x140] sm:$0xff] %vm3046_vm4, %v3005_v17 }
 0xb67   : >> { %v3038_v18 = vpop.trf.xlu1 }
 0xb68   : >> { %v3006_v19 = vpop.trf.xlu0  ;;  %3104 = vst.msk [vmem:[%s4494_s13 + $0x1c8] sm:$0xff] %vm3046_vm4, %v3038_v18 }
 0xb69   : >> { %3088 = vst.msk [vmem:[%s4494_s13 + $0x148] sm:$0xff] %vm3046_vm4, %v3006_v19 }
 0xb6b   : >> { %v3039_v20 = vpop.trf.xlu1 }
 0xb6c   : >> { %v3007_v21 = vpop.trf.xlu0  ;;  %3105 = vst.msk [vmem:[%s4494_s13 + $0x1d0] sm:$0xff] %vm3046_vm4, %v3039_v20 }
 0xb6d   : >> { %3089 = vst.msk [vmem:[%s4494_s13 + $0x150] sm:$0xff] %vm3046_vm4, %v3007_v21 }
 0xb6f   : >> { %v3040_v22 = vpop.trf.xlu1 }
 0xb70   : >> { %v3008_v23 = vpop.trf.xlu0  ;;  %3106 = vst.msk [vmem:[%s4494_s13 + $0x1d8] sm:$0xff] %vm3046_vm4, %v3040_v22 }
 0xb71   : >> { %3090 = vst.msk [vmem:[%s4494_s13 + $0x158] sm:$0xff] %vm3046_vm4, %v3008_v23 }
 0xb73   : >> { %v3041_v24 = vpop.trf.xlu1 }
 0xb74   : >> { %v3009_v25 = vpop.trf.xlu0  ;;  %3107 = vst.msk [vmem:[%s4494_s13 + $0x1e0] sm:$0xff] %vm3046_vm4, %v3041_v24 }
 0xb75   : >> { %3091 = vst.msk [vmem:[%s4494_s13 + $0x160] sm:$0xff] %vm3046_vm4, %v3009_v25 }
 0xb77   : >> { %v3042_v26 = vpop.trf.xlu1 }
 0xb78   : >> { %v3010_v27 = vpop.trf.xlu0  ;;  %3108 = vst.msk [vmem:[%s4494_s13 + $0x1e8] sm:$0xff] %vm3046_vm4, %v3042_v26 }
 0xb79   : >> { %3092 = vst.msk [vmem:[%s4494_s13 + $0x168] sm:$0xff] %vm3046_vm4, %v3010_v27 }
 0xb7b   : >> { %v3043_v28 = vpop.trf.xlu1  ;;  %286 = sbr.rel (!%p284_p4) target bundleno = 16 (0x10), region = 103 }
 0xb7c   : >> { %v3011_v29 = vpop.trf.xlu0  ;;  %3109 = vst.msk [vmem:[%s4494_s13 + $0x1f0] sm:$0xff] %vm3046_vm4, %v3043_v28 }
 0xb7d   : >> { %3093 = vst.msk [vmem:[%s4494_s13 + $0x170] sm:$0xff] %vm3046_vm4, %v3011_v29 }
 0xb7f   : >> { %v3044_v30 = vpop.trf.xlu1 }
 0xb80   : >> { %v3012_v31 = vpop.trf.xlu0  ;;  %3110 = vst.msk [vmem:[%s4494_s13 + $0x1f8] sm:$0xff] %vm3046_vm4, %v3044_v30 }
 0xb81   : >> { %3094 = vst.msk [vmem:[%s4494_s13 + $0x178] sm:$0xff] %vm3046_vm4, %v3012_v31 }
 0xb82 PF: > { %s17_s24 = sadd.s32 1, %s3924_s24  }
 0xb83   : > { %p14_p5 = scmp.ge.s32.totalorder %s17_s24, 10  }
 0xb85   :  { %16 = sbr.rel (!%p14_p5) target bundleno = 1 (0x1), region = 114 }

</bundles_post_ra>
